<compile_context>
chip_gen: v5e
topology: v5e:2x2
jax: 0.10.0
libtpu: 0.0.40
codegen_flags: <defaults>
</compile_context>

<pallas_src>
import math

import numpy as np
import jax
import jax.numpy as jnp
from jax.experimental import pallas as pl
from jax.experimental.pallas import tpu as pltpu


# ------------------------- in-kernel helpers -------------------------

def _norm(x, alpha, bias, eps=1e-6):
    # PyTorch Norm: alpha * (x - mean) / (std_unbiased + eps) + bias
    d = x.shape[-1]
    mean = jnp.mean(x, axis=-1, keepdims=True)
    var = jnp.sum((x - mean) ** 2, axis=-1, keepdims=True) / (d - 1)  # unbiased (torch.std)
    inv = pl.reciprocal(jnp.sqrt(var) + eps, approx=True)
    return alpha * (x - mean) * inv + bias


def _softmax(x):
    m = jnp.max(x, axis=-1, keepdims=True)
    e = jnp.exp(x - m)
    return e * pl.reciprocal(jnp.sum(e, axis=-1, keepdims=True), approx=True)


# ------------------------- fused encoder kernel -------------------------

def make_encoder_kernel(N, heads, d_model, S, b_blk):
    d_k = d_model // heads
    M = b_blk * S
    bf16 = jnp.bfloat16

    def kernel(x0_ref, nf_ref, vecs_ref, wqkv_ref, bqkv_ref, wo_ref,
               w1_ref, b1_ref, w2_ref, out_ref, x_ref):
        l = pl.program_id(1)

        # --- layer 0: load the (already embedded + PE'd) activation into scratch ---
        @pl.when(l == 0)
        def _():
            x_ref[...] = x0_ref[...].reshape(M, d_model)

        x = x_ref[...]                                   # f32 (M, d_model)
        vecs = vecs_ref[0]                               # (6, d_model): n1_a n1_b bo n2_a n2_b b2

        # --- self-attention sublayer (pre-norm + residual) ---
        x2 = _norm(x, vecs[0:1], vecs[1:2])
        qkv = jnp.dot(x2.astype(bf16), wqkv_ref[0],
                      preferred_element_type=jnp.float32) + bqkv_ref[0]    # (M, 3*d_model)
        q = qkv[:, :d_model]
        k = qkv[:, d_model:2 * d_model]
        v = qkv[:, 2 * d_model:]

        def split_heads(t):
            # (M, d_model) -> (b_blk*heads, S, d_k); head h = lane columns [h*d_k:(h+1)*d_k]
            parts = []
            for b in range(b_blk):
                rows = t[b * S:(b + 1) * S]
                for h in range(heads):
                    parts.append(rows[:, h * d_k:(h + 1) * d_k])
            return jnp.stack(parts, axis=0).astype(bf16)

        qh, kh, vh = split_heads(q), split_heads(k), split_heads(v)

        scores = jnp.einsum('nqd,nkd->nqk', qh, kh,
                            preferred_element_type=jnp.float32)            # (b*H, S, S)
        attn = _softmax(scores)
        ctx = jnp.einsum('nqk,nkd->nqd', attn.astype(bf16), vh,
                         preferred_element_type=jnp.float32)               # (b*H, S, d_k)

        # lane-concat heads back to (M, d_model), then one full-width output projection
        rows = [jnp.concatenate([ctx[b * heads + h] for h in range(heads)], axis=-1)
                for b in range(b_blk)]
        ctx_flat = jnp.concatenate(rows, axis=0).astype(bf16)              # (M, d_model)

        x = x + jnp.dot(ctx_flat, wo_ref[0],
                        preferred_element_type=jnp.float32) + vecs[2:3]

        # --- feed-forward sublayer (pre-norm + residual) ---
        x2 = _norm(x, vecs[3:4], vecs[4:5]).astype(bf16)
        h1 = jnp.dot(x2, w1_ref[0], preferred_element_type=jnp.float32) + b1_ref[0]
        h1 = jnp.maximum(h1, 0.0).astype(bf16)                             # ReLU
        x = x + jnp.dot(h1, w2_ref[0], preferred_element_type=jnp.float32) + vecs[5:6]

        x_ref[...] = x

        # --- last layer: final Norm + store ---
        @pl.when(l == N - 1)
        def _():
            y = _norm(x, nf_ref[0:1], nf_ref[1:2])
            out_ref[...] = y.reshape(b_blk, S, d_model).astype(out_ref.dtype)

    return kernel


# ------------------------- host-side parameter prep -------------------------

def prep_params(params, *, N, heads):
    """Fused/packed, bf16 weights, attention scale folded into the Q columns."""
    d_model = params["embed_w"].shape[1]
    d_k = d_model // heads
    scale = 1.0 / math.sqrt(d_k)
    bf16 = jnp.bfloat16

    wqkv = jnp.concatenate([params["wq"] * scale, params["wk"], params["wv"]],
                           axis=-1)                                   # (N, d_model, 3*d_model)
    bqkv = jnp.concatenate([params["bq"] * scale, params["bk"], params["bv"]],
                           axis=-1)                                   # (N, 1, 3*d_model)
    vecs = jnp.concatenate([params["n1_a"], params["n1_b"], params["bo"],
                            params["n2_a"], params["n2_b"], params["b2"]],
                           axis=1)                                    # (N, 6, d_model)
    nf = jnp.concatenate([params["nf_a"], params["nf_b"]], axis=0)    # (2, d_model)

    return dict(
        wqkv=wqkv.astype(bf16), bqkv=bqkv,
        wo=params["wo"].astype(bf16),
        w1=params["w1"].astype(bf16), b1=params["b1"],
        w2=params["w2"].astype(bf16),
        vecs=vecs, nf=nf,
    )


def _vmem_limit_bytes():
    # ~70% of physical VMEM (v5e/v6e: 128 MiB, v7x: 64 MiB), capped.
    try:
        info = pltpu.get_tpu_info()
        cap = getattr(info, "vmem_capacity_bytes", None)
        if cap:
            return int(min(cap * 0.7, 100 * 1024 * 1024))
    except Exception:
        pass
    return 40 * 1024 * 1024


# ------------------------- wrapper -------------------------

def encoder_forward(src, params, *, N, heads, b_blk=None):
    B, S, d_input = src.shape
    d_model = params["embed_w"].shape[1]
    p = prep_params(params, N=N, heads=heads)
    bf16 = jnp.bfloat16

    # Embed (nn.Linear) + PositionalEncoder hoisted to plain XLA (K = d_input is tiny).
    x0 = jnp.matmul(src.astype(jnp.float32).astype(bf16), params["embed_w"].astype(bf16),
                    preferred_element_type=jnp.float32) + params["embed_b"]
    x0 = x0 * math.sqrt(d_model) + params["pe"][None, :S]             # (B, S, d_model) f32

    # Batch block size: largest divisor of B with a modest activation footprint.
    if b_blk is None:
        cap = max(1, 1024 // S)
        b_blk = 1
        for d in range(1, B + 1):
            if B % d == 0 and d <= cap:
                b_blk = d
    n_bb = B // b_blk

    def per_layer(a):
        nd = a.ndim
        return pl.BlockSpec((1,) + a.shape[1:],
                            lambda bb, l, _nd=nd: (l,) + (0,) * (_nd - 1))

    in_specs = [
        pl.BlockSpec((b_blk, S, d_model), lambda bb, l: (bb, 0, 0)),  # x0 (per batch block)
        pl.BlockSpec((2, d_model), lambda bb, l: (0, 0)),             # final norm params
        per_layer(p["vecs"]),
        per_layer(p["wqkv"]), per_layer(p["bqkv"]),
        per_layer(p["wo"]),
        per_layer(p["w1"]), per_layer(p["b1"]), per_layer(p["w2"]),
    ]

    kernel = make_encoder_kernel(N, heads, d_model, S, b_blk)
    return pl.pallas_call(
        kernel,
        out_shape=jax.ShapeDtypeStruct((B, S, d_model), jnp.float32),
        grid=(n_bb, N),
        in_specs=in_specs,
        out_specs=pl.BlockSpec((b_blk, S, d_model), lambda bb, l: (bb, 0, 0)),
        scratch_shapes=[pltpu.VMEM((b_blk * S, d_model), jnp.float32)],
        compiler_params=pltpu.CompilerParams(
            dimension_semantics=("parallel", "arbitrary"),
            vmem_limit_bytes=_vmem_limit_bytes(),
        ),
    )(x0, p["nf"], p["vecs"], p["wqkv"], p["bqkv"], p["wo"], p["w1"], p["b1"], p["w2"])


# ------------------------- parameter / PE setup (glue) -------------------------

def make_pe_table(max_seq_len, d_model):
    # Same (quirky) formula as the reference PositionalEncoder
    pe = np.zeros((max_seq_len, d_model), dtype=np.float32)
    for pos in range(max_seq_len):
        for i in range(0, d_model, 2):
            pe[pos, i] = math.sin(pos / (10000 ** ((2 * i) / d_model)))
            pe[pos, i + 1] = math.cos(pos / (10000 ** ((2 * (i + 1)) / d_model)))
    return jnp.asarray(pe)


def init_params(key, d_input, d_model, N, heads, max_seq_len, d_ff):
    ks = jax.random.split(key, 16)

    def w(k, shape, scale=0.05):
        return (scale * jax.random.normal(k, shape)).astype(jnp.float32)

    return {
        "pe": make_pe_table(max_seq_len, d_model),
        "embed_w": w(ks[0], (d_input, d_model)),
        "embed_b": w(ks[1], (1, d_model)),
        "n1_a": jnp.ones((N, 1, d_model), jnp.float32),
        "n1_b": jnp.zeros((N, 1, d_model), jnp.float32),
        "n2_a": jnp.ones((N, 1, d_model), jnp.float32),
        "n2_b": jnp.zeros((N, 1, d_model), jnp.float32),
        "wq": w(ks[2], (N, d_model, d_model)),
        "bq": w(ks[3], (N, 1, d_model)),
        "wk": w(ks[4], (N, d_model, d_model)),
        "bk": w(ks[5], (N, 1, d_model)),
        "wv": w(ks[6], (N, d_model, d_model)),
        "bv": w(ks[7], (N, 1, d_model)),
        "wo": w(ks[8], (N, d_model, d_model)),
        "bo": w(ks[9], (N, 1, d_model)),
        "w1": w(ks[10], (N, d_model, d_ff)),
        "b1": w(ks[11], (N, 1, d_ff)),
        "w2": w(ks[12], (N, d_ff, d_model)),
        "b2": w(ks[13], (N, 1, d_model)),
        "nf_a": jnp.ones((1, d_model), jnp.float32),
        "nf_b": jnp.zeros((1, d_model), jnp.float32),
    }


# ------------------------- pure-JAX reference (for verification) -------------------------
# Mirrors the PyTorch Encoder.forward; matmul operands are cast to bf16 (f32 accumulate)
# to match the kernel's deliberate MXU precision choice.

def encoder_reference(src, params, *, N, heads):
    d_model = params["embed_w"].shape[1]
    d_k = d_model // heads
    B, S, _ = src.shape
    bf16 = jnp.bfloat16

    def mm(a, b):
        return jnp.matmul(a.astype(bf16), b.astype(bf16),
                          preferred_element_type=jnp.float32)

    def norm(x, a, b, eps=1e-6):
        m = x.mean(-1, keepdims=True)
        s = jnp.sqrt(((x - m) ** 2).sum(-1, keepdims=True) / (x.shape[-1] - 1))
        return a * (x - m) / (s + eps) + b

    x = mm(src.astype(jnp.float32), params["embed_w"]) + params["embed_b"]
    x = x * math.sqrt(d_model) + params["pe"][None, :S]
    for i in range(N):
        x2 = norm(x, params["n1_a"][i], params["n1_b"][i])
        q = mm(x2, params["wq"][i]) + params["bq"][i]
        k = mm(x2, params["wk"][i]) + params["bk"][i]
        v = mm(x2, params["wv"][i]) + params["bv"][i]
        split = lambda t: t.reshape(B, S, heads, d_k).transpose(0, 2, 1, 3)
        qh, kh, vh = split(q), split(k), split(v)
        sc = jnp.einsum('bhqd,bhkd->bhqk', qh.astype(bf16), kh.astype(bf16),
                        preferred_element_type=jnp.float32) / math.sqrt(d_k)
        at = jax.nn.softmax(sc, axis=-1)
        o = jnp.einsum('bhqk,bhkd->bhqd', at.astype(bf16), vh.astype(bf16),
                       preferred_element_type=jnp.float32)
        o = o.transpose(0, 2, 1, 3).reshape(B, S, d_model)
        x = x + (mm(o, params["wo"][i]) + params["bo"][i])
        x2 = norm(x, params["n2_a"][i], params["n2_b"][i])
        h = jnp.maximum(mm(x2, params["w1"][i]) + params["b1"][i], 0.0)
        x = x + (mm(h, params["w2"][i]) + params["b2"][i])
    return norm(x, params["nf_a"], params["nf_b"])


# ------------------------- main -------------------------

if __name__ == "__main__":
    # Small but lane-friendly shapes consistent with
    # Encoder(d_input, d_model, N, heads, dropout, max_seq_len)
    B, S = 2, 8
    d_input, d_model, N, heads, max_seq_len = 8, 128, 2, 4, 16
    d_ff = 256  # FeedForward hidden size (scaled down from the 2048 default for this test)

    key = jax.random.PRNGKey(0)
    k_src, k_par = jax.random.split(key)
    src = jax.random.normal(k_src, (B, S, d_input), dtype=jnp.float32)
    params = init_params(k_par, d_input, d_model, N, heads, max_seq_len, d_ff)

    out = jax.block_until_ready(encoder_forward(src, params, N=N, heads=heads))
    ref = encoder_reference(src, params, N=N, heads=heads)

    assert out.shape == (B, S, d_model)
    np.testing.assert_allclose(np.asarray(out), np.asarray(ref), atol=5e-2, rtol=5e-2)

    print("KERNEL_OK")
</pallas_src>

<mosaic_0001>
module attributes {stable_mosaic.version = 11 : i64} {
  func.func @kernel(%arg0: i32, %arg1: i32, %arg2: memref<2x8x128xf32, #tpu.memory_space<vmem>>, %arg3: memref<2x128xf32, #tpu.memory_space<vmem>>, %arg4: memref<1x6x128xf32, #tpu.memory_space<vmem>>, %arg5: memref<1x128x384xbf16, #tpu.memory_space<vmem>>, %arg6: memref<1x1x384xf32, #tpu.memory_space<vmem>>, %arg7: memref<1x128x128xbf16, #tpu.memory_space<vmem>>, %arg8: memref<1x128x256xbf16, #tpu.memory_space<vmem>>, %arg9: memref<1x1x256xf32, #tpu.memory_space<vmem>>, %arg10: memref<1x256x128xbf16, #tpu.memory_space<vmem>>, %arg11: memref<2x8x128xf32, #tpu.memory_space<vmem>>, %arg12: memref<16x128xf32, #tpu.memory_space<vmem>>) attributes {dimension_semantics = [#tpu.dimension_semantics<parallel>, #tpu.dimension_semantics<arbitrary>], iteration_bounds = array<i64: 1, 2>, scalar_prefetch = 0 : i64, scratch_operands = 1 : i64, tpu.core_type = #tpu.core_type<tc>, window_params = [{transform_indices = @transform_0, window_bounds = array<i64: 2, 8, 128>}, {pipeline_mode = #tpu.pipeline_mode<synchronous>, transform_indices = @transform_1, window_bounds = array<i64: 2, 128>}, {transform_indices = @transform_2, window_bounds = array<i64: 1, 6, 128>}, {transform_indices = @transform_3, window_bounds = array<i64: 1, 128, 384>}, {transform_indices = @transform_4, window_bounds = array<i64: 1, 1, 384>}, {transform_indices = @transform_5, window_bounds = array<i64: 1, 128, 128>}, {transform_indices = @transform_6, window_bounds = array<i64: 1, 128, 256>}, {transform_indices = @transform_7, window_bounds = array<i64: 1, 1, 256>}, {transform_indices = @transform_8, window_bounds = array<i64: 1, 256, 128>}, {transform_indices = @transform_9, window_bounds = array<i64: 2, 8, 128>}]} {
    %c0_i32 = arith.constant 0 : i32
    %0 = arith.cmpi eq, %arg1, %c0_i32 : i32
    %1 = arith.extui %0 : i1 to i32
    %c0_i32_0 = arith.constant 0 : i32
    %2 = arith.cmpi ne, %1, %c0_i32_0 : i32
    scf.if %2 {
      %c0_44 = arith.constant 0 : index
      %c0_45 = arith.constant 0 : index
      %c0_46 = arith.constant 0 : index
      %189 = vector.load %arg2[%c0_44, %c0_45, %c0_46] : memref<2x8x128xf32, #tpu.memory_space<vmem>>, vector<2x8x128xf32>
      %190 = vector.shape_cast %189 : vector<2x8x128xf32> to vector<16x128xf32>
      %c0_47 = arith.constant 0 : index
      %c0_48 = arith.constant 0 : index
      %191 = vector.load %arg12[%c0_47, %c0_48] : memref<16x128xf32, #tpu.memory_space<vmem>>, vector<16x128xf32>
      tpu.vector_store %arg12[%c0_47, %c0_48], %190 {strides = array<i32>} : memref<16x128xf32, #tpu.memory_space<vmem>>, vector<16x128xf32>,
    } else {
    }
    %c0 = arith.constant 0 : index
    %c0_1 = arith.constant 0 : index
    %3 = vector.load %arg12[%c0, %c0_1] : memref<16x128xf32, #tpu.memory_space<vmem>>, vector<16x128xf32>
    %c0_2 = arith.constant 0 : index
    %c0_3 = arith.constant 0 : index
    %c0_4 = arith.constant 0 : index
    %4 = vector.load %arg4[%c0_2, %c0_3, %c0_4] : memref<1x6x128xf32, #tpu.memory_space<vmem>>, vector<1x6x128xf32>
    %5 = vector.shape_cast %4 : vector<1x6x128xf32> to vector<6x128xf32>
    %6 = vector.extract_strided_slice %5 {offsets = [0, 0], sizes = [1, 128], strides = [1, 1]} : vector<6x128xf32> to vector<1x128xf32>
    %7 = vector.extract_strided_slice %5 {offsets = [1, 0], sizes = [1, 128], strides = [1, 1]} : vector<6x128xf32> to vector<1x128xf32>
    %cst = arith.constant dense<0.000000e+00> : vector<16xf32>
    %8 = vector.multi_reduction <add>, %3, %cst [1] : vector<16x128xf32> to vector<16xf32>
    %9 = vector.shape_cast %8 : vector<16xf32> to vector<16x1xf32>
    %cst_5 = arith.constant 1.280000e+02 : f32
    %10 = vector.broadcast %cst_5 : f32 to vector<16x1xf32>
    %11 = arith.divf %9, %10 : vector<16x1xf32>
    %12 = vector.broadcast %11 : vector<16x1xf32> to vector<16x128xf32>
    %13 = arith.subf %3, %12 : vector<16x128xf32>
    %14 = arith.mulf %13, %13 : vector<16x128xf32>
    %cst_6 = arith.constant dense<0.000000e+00> : vector<16xf32>
    %15 = vector.multi_reduction <add>, %14, %cst_6 [1] : vector<16x128xf32> to vector<16xf32>
    %16 = vector.shape_cast %15 : vector<16xf32> to vector<16x1xf32>
    %cst_7 = arith.constant 1.270000e+02 : f32
    %17 = vector.broadcast %cst_7 : f32 to vector<16x1xf32>
    %18 = arith.divf %16, %17 : vector<16x1xf32>
    %19 = math.sqrt %18 : vector<16x1xf32>
    %cst_8 = arith.constant 9.99999997E-7 : f32
    %20 = vector.broadcast %cst_8 : f32 to vector<16x1xf32>
    %21 = arith.addf %19, %20 : vector<16x1xf32>
    %22 = tpu.reciprocal %21 {approx = true} : vector<16x1xf32> -> vector<16x1xf32>
    %23 = vector.broadcast %11 : vector<16x1xf32> to vector<16x128xf32>
    %24 = arith.subf %3, %23 : vector<16x128xf32>
    %25 = vector.broadcast %6 : vector<1x128xf32> to vector<16x128xf32>
    %26 = arith.mulf %25, %24 : vector<16x128xf32>
    %27 = vector.broadcast %22 : vector<16x1xf32> to vector<16x128xf32>
    %28 = arith.mulf %26, %27 : vector<16x128xf32>
    %29 = vector.broadcast %7 : vector<1x128xf32> to vector<16x128xf32>
    %30 = arith.addf %28, %29 : vector<16x128xf32>
    %31 = arith.truncf %30 : vector<16x128xf32> to vector<16x128xbf16>
    %c0_9 = arith.constant 0 : index
    %c0_10 = arith.constant 0 : index
    %c0_11 = arith.constant 0 : index
    %32 = vector.load %arg5[%c0_9, %c0_10, %c0_11] : memref<1x128x384xbf16, #tpu.memory_space<vmem>>, vector<1x128x384xbf16>
    %33 = vector.shape_cast %32 : vector<1x128x384xbf16> to vector<128x384xbf16>
    %cst_12 = arith.constant dense<0.000000e+00> : vector<16x384xf32>
    %34 = tpu.matmul %31, %33, %cst_12 {dimension_numbers = #tpu.dot_dimension_numbers<[1], [0], [0], [1], [0, 0, 1, 1], [], []>} : vector<16x128xbf16>, vector<128x384xbf16>, vector<16x384xf32> -> vector<16x384xf32>
    %c0_13 = arith.constant 0 : index
    %c0_14 = arith.constant 0 : index
    %c0_15 = arith.constant 0 : index
    %35 = vector.load %arg6[%c0_13, %c0_14, %c0_15] : memref<1x1x384xf32, #tpu.memory_space<vmem>>, vector<1x1x384xf32>
    %36 = vector.shape_cast %35 : vector<1x1x384xf32> to vector<1x384xf32>
    %37 = vector.broadcast %36 : vector<1x384xf32> to vector<16x384xf32>
    %38 = arith.addf %34, %37 : vector<16x384xf32>
    %39 = vector.extract_strided_slice %38 {offsets = [0, 0], sizes = [16, 128], strides = [1, 1]} : vector<16x384xf32> to vector<16x128xf32>
    %40 = vector.extract_strided_slice %38 {offsets = [0, 128], sizes = [16, 128], strides = [1, 1]} : vector<16x384xf32> to vector<16x128xf32>
    %41 = vector.extract_strided_slice %38 {offsets = [0, 256], sizes = [16, 128], strides = [1, 1]} : vector<16x384xf32> to vector<16x128xf32>
    %42 = vector.extract_strided_slice %39 {offsets = [0, 0], sizes = [8, 128], strides = [1, 1]} : vector<16x128xf32> to vector<8x128xf32>
    %43 = vector.extract_strided_slice %42 {offsets = [0, 0], sizes = [8, 32], strides = [1, 1]} : vector<8x128xf32> to vector<8x32xf32>
    %44 = vector.extract_strided_slice %42 {offsets = [0, 32], sizes = [8, 32], strides = [1, 1]} : vector<8x128xf32> to vector<8x32xf32>
    %45 = vector.extract_strided_slice %42 {offsets = [0, 64], sizes = [8, 32], strides = [1, 1]} : vector<8x128xf32> to vector<8x32xf32>
    %46 = vector.extract_strided_slice %42 {offsets = [0, 96], sizes = [8, 32], strides = [1, 1]} : vector<8x128xf32> to vector<8x32xf32>
    %47 = vector.extract_strided_slice %39 {offsets = [8, 0], sizes = [8, 128], strides = [1, 1]} : vector<16x128xf32> to vector<8x128xf32>
    %48 = vector.extract_strided_slice %47 {offsets = [0, 0], sizes = [8, 32], strides = [1, 1]} : vector<8x128xf32> to vector<8x32xf32>
    %49 = vector.extract_strided_slice %47 {offsets = [0, 32], sizes = [8, 32], strides = [1, 1]} : vector<8x128xf32> to vector<8x32xf32>
    %50 = vector.extract_strided_slice %47 {offsets = [0, 64], sizes = [8, 32], strides = [1, 1]} : vector<8x128xf32> to vector<8x32xf32>
    %51 = vector.extract_strided_slice %47 {offsets = [0, 96], sizes = [8, 32], strides = [1, 1]} : vector<8x128xf32> to vector<8x32xf32>
    %52 = vector.shape_cast %43 : vector<8x32xf32> to vector<1x8x32xf32>
    %53 = vector.shape_cast %44 : vector<8x32xf32> to vector<1x8x32xf32>
    %54 = vector.shape_cast %45 : vector<8x32xf32> to vector<1x8x32xf32>
    %55 = vector.shape_cast %46 : vector<8x32xf32> to vector<1x8x32xf32>
    %56 = vector.shape_cast %48 : vector<8x32xf32> to vector<1x8x32xf32>
    %57 = vector.shape_cast %49 : vector<8x32xf32> to vector<1x8x32xf32>
    %58 = vector.shape_cast %50 : vector<8x32xf32> to vector<1x8x32xf32>
    %59 = vector.shape_cast %51 : vector<8x32xf32> to vector<1x8x32xf32>
    %60 = tpu.concatenate %52, %53, %54, %55, %56, %57, %58, %59 in 0 : vector<1x8x32xf32>, vector<1x8x32xf32>, vector<1x8x32xf32>, vector<1x8x32xf32>, vector<1x8x32xf32>, vector<1x8x32xf32>, vector<1x8x32xf32>, vector<1x8x32xf32> -> vector<8x8x32xf32>
    %61 = arith.truncf %60 : vector<8x8x32xf32> to vector<8x8x32xbf16>
    %62 = vector.extract_strided_slice %40 {offsets = [0, 0], sizes = [8, 128], strides = [1, 1]} : vector<16x128xf32> to vector<8x128xf32>
    %63 = vector.extract_strided_slice %62 {offsets = [0, 0], sizes = [8, 32], strides = [1, 1]} : vector<8x128xf32> to vector<8x32xf32>
    %64 = vector.extract_strided_slice %62 {offsets = [0, 32], sizes = [8, 32], strides = [1, 1]} : vector<8x128xf32> to vector<8x32xf32>
    %65 = vector.extract_strided_slice %62 {offsets = [0, 64], sizes = [8, 32], strides = [1, 1]} : vector<8x128xf32> to vector<8x32xf32>
    %66 = vector.extract_strided_slice %62 {offsets = [0, 96], sizes = [8, 32], strides = [1, 1]} : vector<8x128xf32> to vector<8x32xf32>
    %67 = vector.extract_strided_slice %40 {offsets = [8, 0], sizes = [8, 128], strides = [1, 1]} : vector<16x128xf32> to vector<8x128xf32>
    %68 = vector.extract_strided_slice %67 {offsets = [0, 0], sizes = [8, 32], strides = [1, 1]} : vector<8x128xf32> to vector<8x32xf32>
    %69 = vector.extract_strided_slice %67 {offsets = [0, 32], sizes = [8, 32], strides = [1, 1]} : vector<8x128xf32> to vector<8x32xf32>
    %70 = vector.extract_strided_slice %67 {offsets = [0, 64], sizes = [8, 32], strides = [1, 1]} : vector<8x128xf32> to vector<8x32xf32>
    %71 = vector.extract_strided_slice %67 {offsets = [0, 96], sizes = [8, 32], strides = [1, 1]} : vector<8x128xf32> to vector<8x32xf32>
    %72 = vector.shape_cast %63 : vector<8x32xf32> to vector<1x8x32xf32>
    %73 = vector.shape_cast %64 : vector<8x32xf32> to vector<1x8x32xf32>
    %74 = vector.shape_cast %65 : vector<8x32xf32> to vector<1x8x32xf32>
    %75 = vector.shape_cast %66 : vector<8x32xf32> to vector<1x8x32xf32>
    %76 = vector.shape_cast %68 : vector<8x32xf32> to vector<1x8x32xf32>
    %77 = vector.shape_cast %69 : vector<8x32xf32> to vector<1x8x32xf32>
    %78 = vector.shape_cast %70 : vector<8x32xf32> to vector<1x8x32xf32>
    %79 = vector.shape_cast %71 : vector<8x32xf32> to vector<1x8x32xf32>
    %80 = tpu.concatenate %72, %73, %74, %75, %76, %77, %78, %79 in 0 : vector<1x8x32xf32>, vector<1x8x32xf32>, vector<1x8x32xf32>, vector<1x8x32xf32>, vector<1x8x32xf32>, vector<1x8x32xf32>, vector<1x8x32xf32>, vector<1x8x32xf32> -> vector<8x8x32xf32>
    %81 = arith.truncf %80 : vector<8x8x32xf32> to vector<8x8x32xbf16>
    %82 = vector.extract_strided_slice %41 {offsets = [0, 0], sizes = [8, 128], strides = [1, 1]} : vector<16x128xf32> to vector<8x128xf32>
    %83 = vector.extract_strided_slice %82 {offsets = [0, 0], sizes = [8, 32], strides = [1, 1]} : vector<8x128xf32> to vector<8x32xf32>
    %84 = vector.extract_strided_slice %82 {offsets = [0, 32], sizes = [8, 32], strides = [1, 1]} : vector<8x128xf32> to vector<8x32xf32>
    %85 = vector.extract_strided_slice %82 {offsets = [0, 64], sizes = [8, 32], strides = [1, 1]} : vector<8x128xf32> to vector<8x32xf32>
    %86 = vector.extract_strided_slice %82 {offsets = [0, 96], sizes = [8, 32], strides = [1, 1]} : vector<8x128xf32> to vector<8x32xf32>
    %87 = vector.extract_strided_slice %41 {offsets = [8, 0], sizes = [8, 128], strides = [1, 1]} : vector<16x128xf32> to vector<8x128xf32>
    %88 = vector.extract_strided_slice %87 {offsets = [0, 0], sizes = [8, 32], strides = [1, 1]} : vector<8x128xf32> to vector<8x32xf32>
    %89 = vector.extract_strided_slice %87 {offsets = [0, 32], sizes = [8, 32], strides = [1, 1]} : vector<8x128xf32> to vector<8x32xf32>
    %90 = vector.extract_strided_slice %87 {offsets = [0, 64], sizes = [8, 32], strides = [1, 1]} : vector<8x128xf32> to vector<8x32xf32>
    %91 = vector.extract_strided_slice %87 {offsets = [0, 96], sizes = [8, 32], strides = [1, 1]} : vector<8x128xf32> to vector<8x32xf32>
    %92 = vector.shape_cast %83 : vector<8x32xf32> to vector<1x8x32xf32>
    %93 = vector.shape_cast %84 : vector<8x32xf32> to vector<1x8x32xf32>
    %94 = vector.shape_cast %85 : vector<8x32xf32> to vector<1x8x32xf32>
    %95 = vector.shape_cast %86 : vector<8x32xf32> to vector<1x8x32xf32>
    %96 = vector.shape_cast %88 : vector<8x32xf32> to vector<1x8x32xf32>
    %97 = vector.shape_cast %89 : vector<8x32xf32> to vector<1x8x32xf32>
    %98 = vector.shape_cast %90 : vector<8x32xf32> to vector<1x8x32xf32>
    %99 = vector.shape_cast %91 : vector<8x32xf32> to vector<1x8x32xf32>
    %100 = tpu.concatenate %92, %93, %94, %95, %96, %97, %98, %99 in 0 : vector<1x8x32xf32>, vector<1x8x32xf32>, vector<1x8x32xf32>, vector<1x8x32xf32>, vector<1x8x32xf32>, vector<1x8x32xf32>, vector<1x8x32xf32>, vector<1x8x32xf32> -> vector<8x8x32xf32>
    %101 = arith.truncf %100 : vector<8x8x32xf32> to vector<8x8x32xbf16>
    "tpu.trace_start"() <{level = 10 : i32, message = "nqd,nkd->nqk"}> : () -> ()
    %cst_16 = arith.constant dense<0.000000e+00> : vector<8x8x8xf32>
    %102 = tpu.matmul %61, %81, %cst_16 {dimension_numbers = #tpu.dot_dimension_numbers<[2], [2], [1], [1], [0, 0, 0, 1, 1, 1], [0], [0]>} : vector<8x8x32xbf16>, vector<8x8x32xbf16>, vector<8x8x8xf32> -> vector<8x8x8xf32>
    "tpu.trace_stop"() : () -> ()
    %cst_17 = arith.constant dense<0xFF800000> : vector<8x8xf32>
    %103 = vector.multi_reduction <maximumf>, %102, %cst_17 [2] : vector<8x8x8xf32> to vector<8x8xf32>
    %104 = vector.shape_cast %103 : vector<8x8xf32> to vector<8x8x1xf32>
    %105 = vector.broadcast %104 : vector<8x8x1xf32> to vector<8x8x8xf32>
    %106 = arith.subf %102, %105 : vector<8x8x8xf32>
    %107 = math.exp %106 : vector<8x8x8xf32>
    %cst_18 = arith.constant dense<0.000000e+00> : vector<8x8xf32>
    %108 = vector.multi_reduction <add>, %107, %cst_18 [2] : vector<8x8x8xf32> to vector<8x8xf32>
    %109 = vector.shape_cast %108 : vector<8x8xf32> to vector<8x8x1xf32>
    %110 = tpu.reciprocal %109 {approx = true} : vector<8x8x1xf32> -> vector<8x8x1xf32>
    %111 = vector.broadcast %110 : vector<8x8x1xf32> to vector<8x8x8xf32>
    %112 = arith.mulf %107, %111 : vector<8x8x8xf32>
    %113 = arith.truncf %112 : vector<8x8x8xf32> to vector<8x8x8xbf16>
    "tpu.trace_start"() <{level = 10 : i32, message = "nqk,nkd->nqd"}> : () -> ()
    %cst_19 = arith.constant dense<0.000000e+00> : vector<8x8x32xf32>
    %114 = tpu.matmul %113, %101, %cst_19 {dimension_numbers = #tpu.dot_dimension_numbers<[2], [1], [1], [2], [0, 0, 0, 1, 1, 2], [0], [0]>} : vector<8x8x8xbf16>, vector<8x8x32xbf16>, vector<8x8x32xf32> -> vector<8x8x32xf32>
    "tpu.trace_stop"() : () -> ()
    %115 = vector.extract_strided_slice %114 {offsets = [0, 0, 0], sizes = [1, 8, 32], strides = [1, 1, 1]} : vector<8x8x32xf32> to vector<1x8x32xf32>
    %116 = vector.shape_cast %115 : vector<1x8x32xf32> to vector<8x32xf32>
    %117 = vector.extract_strided_slice %114 {offsets = [1, 0, 0], sizes = [1, 8, 32], strides = [1, 1, 1]} : vector<8x8x32xf32> to vector<1x8x32xf32>
    %118 = vector.shape_cast %117 : vector<1x8x32xf32> to vector<8x32xf32>
    %119 = vector.extract_strided_slice %114 {offsets = [2, 0, 0], sizes = [1, 8, 32], strides = [1, 1, 1]} : vector<8x8x32xf32> to vector<1x8x32xf32>
    %120 = vector.shape_cast %119 : vector<1x8x32xf32> to vector<8x32xf32>
    %121 = vector.extract_strided_slice %114 {offsets = [3, 0, 0], sizes = [1, 8, 32], strides = [1, 1, 1]} : vector<8x8x32xf32> to vector<1x8x32xf32>
    %122 = vector.shape_cast %121 : vector<1x8x32xf32> to vector<8x32xf32>
    %123 = tpu.concatenate %116, %118, %120, %122 in 1 : vector<8x32xf32>, vector<8x32xf32>, vector<8x32xf32>, vector<8x32xf32> -> vector<8x128xf32>
    %124 = vector.extract_strided_slice %114 {offsets = [4, 0, 0], sizes = [1, 8, 32], strides = [1, 1, 1]} : vector<8x8x32xf32> to vector<1x8x32xf32>
    %125 = vector.shape_cast %124 : vector<1x8x32xf32> to vector<8x32xf32>
    %126 = vector.extract_strided_slice %114 {offsets = [5, 0, 0], sizes = [1, 8, 32], strides = [1, 1, 1]} : vector<8x8x32xf32> to vector<1x8x32xf32>
    %127 = vector.shape_cast %126 : vector<1x8x32xf32> to vector<8x32xf32>
    %128 = vector.extract_strided_slice %114 {offsets = [6, 0, 0], sizes = [1, 8, 32], strides = [1, 1, 1]} : vector<8x8x32xf32> to vector<1x8x32xf32>
    %129 = vector.shape_cast %128 : vector<1x8x32xf32> to vector<8x32xf32>
    %130 = vector.extract_strided_slice %114 {offsets = [7, 0, 0], sizes = [1, 8, 32], strides = [1, 1, 1]} : vector<8x8x32xf32> to vector<1x8x32xf32>
    %131 = vector.shape_cast %130 : vector<1x8x32xf32> to vector<8x32xf32>
    %132 = tpu.concatenate %125, %127, %129, %131 in 1 : vector<8x32xf32>, vector<8x32xf32>, vector<8x32xf32>, vector<8x32xf32> -> vector<8x128xf32>
    %133 = tpu.concatenate %123, %132 in 0 : vector<8x128xf32>, vector<8x128xf32> -> vector<16x128xf32>
    %134 = arith.truncf %133 : vector<16x128xf32> to vector<16x128xbf16>
    %c0_20 = arith.constant 0 : index
    %c0_21 = arith.constant 0 : index
    %c0_22 = arith.constant 0 : index
    %135 = vector.load %arg7[%c0_20, %c0_21, %c0_22] : memref<1x128x128xbf16, #tpu.memory_space<vmem>>, vector<1x128x128xbf16>
    %136 = vector.shape_cast %135 : vector<1x128x128xbf16> to vector<128x128xbf16>
    %cst_23 = arith.constant dense<0.000000e+00> : vector<16x128xf32>
    %137 = tpu.matmul %134, %136, %cst_23 {dimension_numbers = #tpu.dot_dimension_numbers<[1], [0], [0], [1], [0, 0, 1, 1], [], []>} : vector<16x128xbf16>, vector<128x128xbf16>, vector<16x128xf32> -> vector<16x128xf32>
    %138 = arith.addf %3, %137 : vector<16x128xf32>
    %139 = vector.extract_strided_slice %5 {offsets = [2, 0], sizes = [1, 128], strides = [1, 1]} : vector<6x128xf32> to vector<1x128xf32>
    %140 = vector.broadcast %139 : vector<1x128xf32> to vector<16x128xf32>
    %141 = arith.addf %138, %140 : vector<16x128xf32>
    %142 = vector.extract_strided_slice %5 {offsets = [3, 0], sizes = [1, 128], strides = [1, 1]} : vector<6x128xf32> to vector<1x128xf32>
    %143 = vector.extract_strided_slice %5 {offsets = [4, 0], sizes = [1, 128], strides = [1, 1]} : vector<6x128xf32> to vector<1x128xf32>
    %cst_24 = arith.constant dense<0.000000e+00> : vector<16xf32>
    %144 = vector.multi_reduction <add>, %141, %cst_24 [1] : vector<16x128xf32> to vector<16xf32>
    %145 = vector.shape_cast %144 : vector<16xf32> to vector<16x1xf32>
    %cst_25 = arith.constant 1.280000e+02 : f32
    %146 = vector.broadcast %cst_25 : f32 to vector<16x1xf32>
    %147 = arith.divf %145, %146 : vector<16x1xf32>
    %148 = vector.broadcast %147 : vector<16x1xf32> to vector<16x128xf32>
    %149 = arith.subf %141, %148 : vector<16x128xf32>
    %150 = arith.mulf %149, %149 : vector<16x128xf32>
    %cst_26 = arith.constant dense<0.000000e+00> : vector<16xf32>
    %151 = vector.multi_reduction <add>, %150, %cst_26 [1] : vector<16x128xf32> to vector<16xf32>
    %152 = vector.shape_cast %151 : vector<16xf32> to vector<16x1xf32>
    %cst_27 = arith.constant 1.270000e+02 : f32
    %153 = vector.broadcast %cst_27 : f32 to vector<16x1xf32>
    %154 = arith.divf %152, %153 : vector<16x1xf32>
    %155 = math.sqrt %154 : vector<16x1xf32>
    %cst_28 = arith.constant 9.99999997E-7 : f32
    %156 = vector.broadcast %cst_28 : f32 to vector<16x1xf32>
    %157 = arith.addf %155, %156 : vector<16x1xf32>
    %158 = tpu.reciprocal %157 {approx = true} : vector<16x1xf32> -> vector<16x1xf32>
    %159 = vector.broadcast %147 : vector<16x1xf32> to vector<16x128xf32>
    %160 = arith.subf %141, %159 : vector<16x128xf32>
    %161 = vector.broadcast %142 : vector<1x128xf32> to vector<16x128xf32>
    %162 = arith.mulf %161, %160 : vector<16x128xf32>
    %163 = vector.broadcast %158 : vector<16x1xf32> to vector<16x128xf32>
    %164 = arith.mulf %162, %163 : vector<16x128xf32>
    %165 = vector.broadcast %143 : vector<1x128xf32> to vector<16x128xf32>
    %166 = arith.addf %164, %165 : vector<16x128xf32>
    %167 = arith.truncf %166 : vector<16x128xf32> to vector<16x128xbf16>
    %c0_29 = arith.constant 0 : index
    %c0_30 = arith.constant 0 : index
    %c0_31 = arith.constant 0 : index
    %168 = vector.load %arg8[%c0_29, %c0_30, %c0_31] : memref<1x128x256xbf16, #tpu.memory_space<vmem>>, vector<1x128x256xbf16>
    %169 = vector.shape_cast %168 : vector<1x128x256xbf16> to vector<128x256xbf16>
    %cst_32 = arith.constant dense<0.000000e+00> : vector<16x256xf32>
    %170 = tpu.matmul %167, %169, %cst_32 {dimension_numbers = #tpu.dot_dimension_numbers<[1], [0], [0], [1], [0, 0, 1, 1], [], []>} : vector<16x128xbf16>, vector<128x256xbf16>, vector<16x256xf32> -> vector<16x256xf32>
    %c0_33 = arith.constant 0 : index
    %c0_34 = arith.constant 0 : index
    %c0_35 = arith.constant 0 : index
    %171 = vector.load %arg9[%c0_33, %c0_34, %c0_35] : memref<1x1x256xf32, #tpu.memory_space<vmem>>, vector<1x1x256xf32>
    %172 = vector.shape_cast %171 : vector<1x1x256xf32> to vector<1x256xf32>
    %173 = vector.broadcast %172 : vector<1x256xf32> to vector<16x256xf32>
    %174 = arith.addf %170, %173 : vector<16x256xf32>
    %cst_36 = arith.constant 0.000000e+00 : f32
    %175 = vector.broadcast %cst_36 : f32 to vector<16x256xf32>
    %176 = arith.maximumf %174, %175 : vector<16x256xf32>
    %177 = arith.truncf %176 : vector<16x256xf32> to vector<16x256xbf16>
    %c0_37 = arith.constant 0 : index
    %c0_38 = arith.constant 0 : index
    %c0_39 = arith.constant 0 : index
    %178 = vector.load %arg10[%c0_37, %c0_38, %c0_39] : memref<1x256x128xbf16, #tpu.memory_space<vmem>>, vector<1x256x128xbf16>
    %179 = vector.shape_cast %178 : vector<1x256x128xbf16> to vector<256x128xbf16>
    %cst_40 = arith.constant dense<0.000000e+00> : vector<16x128xf32>
    %180 = tpu.matmul %177, %179, %cst_40 {dimension_numbers = #tpu.dot_dimension_numbers<[1], [0], [0], [1], [0, 0, 1, 1], [], []>} : vector<16x256xbf16>, vector<256x128xbf16>, vector<16x128xf32> -> vector<16x128xf32>
    %181 = arith.addf %141, %180 : vector<16x128xf32>
    %182 = vector.extract_strided_slice %5 {offsets = [5, 0], sizes = [1, 128], strides = [1, 1]} : vector<6x128xf32> to vector<1x128xf32>
    %183 = vector.broadcast %182 : vector<1x128xf32> to vector<16x128xf32>
    %184 = arith.addf %181, %183 : vector<16x128xf32>
    %c0_41 = arith.constant 0 : index
    %c0_42 = arith.constant 0 : index
    %185 = vector.load %arg12[%c0_41, %c0_42] : memref<16x128xf32, #tpu.memory_space<vmem>>, vector<16x128xf32>
    tpu.vector_store %arg12[%c0_41, %c0_42], %184 {strides = array<i32>} : memref<16x128xf32, #tpu.memory_space<vmem>>, vector<16x128xf32>,
    %c1_i32 = arith.constant 1 : i32
    %186 = arith.cmpi eq, %arg1, %c1_i32 : i32
    %187 = arith.extui %186 : i1 to i32
    %c0_i32_43 = arith.constant 0 : i32
    %188 = arith.cmpi ne, %187, %c0_i32_43 : i32
    scf.if %188 {
      %c0_44 = arith.constant 0 : index
      %c0_45 = arith.constant 0 : index
      %189 = vector.load %arg3[%c0_44, %c0_45] : memref<2x128xf32, #tpu.memory_space<vmem>>, vector<1x128xf32>
      %c1 = arith.constant 1 : index
      %c0_46 = arith.constant 0 : index
      %190 = vector.load %arg3[%c1, %c0_46] : memref<2x128xf32, #tpu.memory_space<vmem>>, vector<1x128xf32>
      %cst_47 = arith.constant dense<0.000000e+00> : vector<16xf32>
      %191 = vector.multi_reduction <add>, %184, %cst_47 [1] : vector<16x128xf32> to vector<16xf32>
      %192 = vector.shape_cast %191 : vector<16xf32> to vector<16x1xf32>
      %cst_48 = arith.constant 1.280000e+02 : f32
      %193 = vector.broadcast %cst_48 : f32 to vector<16x1xf32>
      %194 = arith.divf %192, %193 : vector<16x1xf32>
      %195 = vector.broadcast %194 : vector<16x1xf32> to vector<16x128xf32>
      %196 = arith.subf %184, %195 : vector<16x128xf32>
      %197 = arith.mulf %196, %196 : vector<16x128xf32>
      %cst_49 = arith.constant dense<0.000000e+00> : vector<16xf32>
      %198 = vector.multi_reduction <add>, %197, %cst_49 [1] : vector<16x128xf32> to vector<16xf32>
      %199 = vector.shape_cast %198 : vector<16xf32> to vector<16x1xf32>
      %cst_50 = arith.constant 1.270000e+02 : f32
      %200 = vector.broadcast %cst_50 : f32 to vector<16x1xf32>
      %201 = arith.divf %199, %200 : vector<16x1xf32>
      %202 = math.sqrt %201 : vector<16x1xf32>
      %cst_51 = arith.constant 9.99999997E-7 : f32
      %203 = vector.broadcast %cst_51 : f32 to vector<16x1xf32>
      %204 = arith.addf %202, %203 : vector<16x1xf32>
      %205 = tpu.reciprocal %204 {approx = true} : vector<16x1xf32> -> vector<16x1xf32>
      %206 = vector.broadcast %194 : vector<16x1xf32> to vector<16x128xf32>
      %207 = arith.subf %184, %206 : vector<16x128xf32>
      %208 = vector.broadcast %189 : vector<1x128xf32> to vector<16x128xf32>
      %209 = arith.mulf %208, %207 : vector<16x128xf32>
      %210 = vector.broadcast %205 : vector<16x1xf32> to vector<16x128xf32>
      %211 = arith.mulf %209, %210 : vector<16x128xf32>
      %212 = vector.broadcast %190 : vector<1x128xf32> to vector<16x128xf32>
      %213 = arith.addf %211, %212 : vector<16x128xf32>
      %214 = vector.shape_cast %213 : vector<16x128xf32> to vector<2x8x128xf32>
      %c0_52 = arith.constant 0 : index
      %c0_53 = arith.constant 0 : index
      %c0_54 = arith.constant 0 : index
      %215 = vector.load %arg11[%c0_52, %c0_53, %c0_54] : memref<2x8x128xf32, #tpu.memory_space<vmem>>, vector<2x8x128xf32>
      tpu.vector_store %arg11[%c0_52, %c0_53, %c0_54], %214 {strides = array<i32>} : memref<2x8x128xf32, #tpu.memory_space<vmem>>, vector<2x8x128xf32>,
    } else {
    }
    return
  }
  func.func @transform_0(%arg0: i32, %arg1: i32) -> (i32, i32, i32) {
    %c0_i32 = arith.constant 0 : i32
    %c0_i32_0 = arith.constant 0 : i32
    %c0_i32_1 = arith.constant 0 : i32
    return %arg0, %c0_i32, %c0_i32_0 : i32, i32, i32
  }
  func.func @transform_1(%arg0: i32, %arg1: i32) -> (i32, i32) {
    %c0_i32 = arith.constant 0 : i32
    %c0_i32_0 = arith.constant 0 : i32
    %c0_i32_1 = arith.constant 0 : i32
    return %c0_i32, %c0_i32_0 : i32, i32
  }
  func.func @transform_2(%arg0: i32, %arg1: i32) -> (i32, i32, i32) {
    %c0_i32 = arith.constant 0 : i32
    %c0_i32_0 = arith.constant 0 : i32
    %c0_i32_1 = arith.constant 0 : i32
    return %arg1, %c0_i32, %c0_i32_0 : i32, i32, i32
  }
  func.func @transform_3(%arg0: i32, %arg1: i32) -> (i32, i32, i32) {
    %c0_i32 = arith.constant 0 : i32
    %c0_i32_0 = arith.constant 0 : i32
    %c0_i32_1 = arith.constant 0 : i32
    return %arg1, %c0_i32, %c0_i32_0 : i32, i32, i32
  }
  func.func @transform_4(%arg0: i32, %arg1: i32) -> (i32, i32, i32) {
    %c0_i32 = arith.constant 0 : i32
    %c0_i32_0 = arith.constant 0 : i32
    %c0_i32_1 = arith.constant 0 : i32
    return %arg1, %c0_i32, %c0_i32_0 : i32, i32, i32
  }
  func.func @transform_5(%arg0: i32, %arg1: i32) -> (i32, i32, i32) {
    %c0_i32 = arith.constant 0 : i32
    %c0_i32_0 = arith.constant 0 : i32
    %c0_i32_1 = arith.constant 0 : i32
    return %arg1, %c0_i32, %c0_i32_0 : i32, i32, i32
  }
  func.func @transform_6(%arg0: i32, %arg1: i32) -> (i32, i32, i32) {
    %c0_i32 = arith.constant 0 : i32
    %c0_i32_0 = arith.constant 0 : i32
    %c0_i32_1 = arith.constant 0 : i32
    return %arg1, %c0_i32, %c0_i32_0 : i32, i32, i32
  }
  func.func @transform_7(%arg0: i32, %arg1: i32) -> (i32, i32, i32) {
    %c0_i32 = arith.constant 0 : i32
    %c0_i32_0 = arith.constant 0 : i32
    %c0_i32_1 = arith.constant 0 : i32
    return %arg1, %c0_i32, %c0_i32_0 : i32, i32, i32
  }
  func.func @transform_8(%arg0: i32, %arg1: i32) -> (i32, i32, i32) {
    %c0_i32 = arith.constant 0 : i32
    %c0_i32_0 = arith.constant 0 : i32
    %c0_i32_1 = arith.constant 0 : i32
    return %arg1, %c0_i32, %c0_i32_0 : i32, i32, i32
  }
  func.func @transform_9(%arg0: i32, %arg1: i32) -> (i32, i32, i32) {
    %c0_i32 = arith.constant 0 : i32
    %c0_i32_0 = arith.constant 0 : i32
    %c0_i32_1 = arith.constant 0 : i32
    return %arg0, %c0_i32, %c0_i32_0 : i32, i32, i32
  }
}

</mosaic_0001>

<bundles_post_ra>
// kernel: tpu_custom_call.1
= control target key start
LH: loop header
LB: loop body
LE: loop exit
PB: predicated region body
PF: predicated region fallthrough
CT: control target
= control target key end

     0   :  { %s3348_s0 = inlined_call_operand.vmem [shape: f32[2,8,128], index: 0, kind: input, shape index: {}]   ;;  %s3349_s1 = inlined_call_operand.vmem [shape: f32[2,128], index: 1, kind: input, shape index: {}]   ;;  %s3350_s2 = inlined_call_operand.vmem [shape: f32[2,6,128], index: 2, kind: input, shape index: {}]   ;;  %s3351_s3 = inlined_call_operand.hbm [shape: bf16[2,128,384], index: 3, kind: input, shape index: {}]   ;;  %s3352_s4 = inlined_call_operand.vmem [shape: f32[2,1,384], index: 4, kind: input, shape index: {}]   ;;  %s3353_s5 = inlined_call_operand.hbm [shape: bf16[2,128,128], index: 5, kind: input, shape index: {}]   ;;  %s3354_s6 = inlined_call_operand.hbm [shape: bf16[2,128,256], index: 6, kind: input, shape index: {}]   ;;  %s3355_s7 = inlined_call_operand.vmem [shape: f32[2,1,256], index: 7, kind: input, shape index: {}]   ;;  %s3356_s8 = inlined_call_operand.hbm [shape: bf16[2,256,128], index: 8, kind: input, shape index: {}]   ;;  %s3357_s9 = inlined_call_operand.hbm [shape: f32[2,8,128], index: 9, kind: output, shape index: {}]  }
   0x1   :  { %3365 = sst [smem:[#allocation20_spill]] %s3348_s0 }
   0x2   :  { %3366 = sst [smem:[#allocation21_spill]] %s3349_s1 }
   0x3   :  { %3367 = sst [smem:[#allocation22_spill]] %s3351_s3 }
   0x4   :  { %3368 = sst [smem:[#allocation23_spill]] %s3353_s5 }
   0x5   :  { %3369 = sst [smem:[#allocation24_spill]] %s3357_s9 }
   0x6   :  { %14 = vsyncpa [#allocation4], 0 }
   0x7   :  { %16 = vsyncpa [#allocation4 + $0x1], 0 }
   0x8   :  { %17 = vsyncpa [#allocation7], 0 }
   0x9   :  { %19 = vsyncpa [#allocation7 + $0x1], 0 }
   0xa   :  { %20 = vsyncpa [#allocation10], 0 }
   0xb   :  { %22 = vsyncpa [#allocation10 + $0x1], 0 }
   0xc   :  { %23 = vsyncpa [#allocation5], 0  ;;  %s2874_s30 = smov 0   ;;  %s2876_s10 = smov 0  }
   0xd   :  { %s2878_s11 = smov 0   ;;  %s2880_s12 = smov 0  }
   0xe   :  { %s2882_s13 = smov 0   ;;  %s2884_s14 = smov 0  }
   0xf LB: > { %3370 = sst [smem:[#allocation16_spill]] %s2796_s11  ;;  %s2903_s15 = sadd.s32 4294967295, %s2808_s14   ;;  %s2808_s14 = sphi %s2884_s14, %s29_s14   ;;  %s2804_s13 = sphi %s2882_s13, %s3391_s13   ;;  %s2800_s12 = sphi %s2880_s12, %s3390_s12   ;;  %s2796_s11 = sphi %s2878_s11, %s3386_s11   ;;  %s2792_s10 = sphi %s2876_s10, %s3389_s10   ;;  %s2788_s30 = sphi %s2874_s30, %s3388_s30  }
  0x10   : > { %3371 = sst [smem:[#allocation17_spill]] %s2808_s14  ;;  %s38_s16 = sadd.s32 1, %s2804_s13 }
  0x11   : > { %p39_p0 = scmp.ge.s32.totalorder %s38_s16, 2  ;;  %s121_s17 = sadd.s32 1, %s2796_s11 }
  0x12   : > { %p128_p1 = scmp.ne.s32.totalorder %s2796_s11, %s2792_s10  ;;  %p129_p2 = scmp.eq.s32.totalorder %s2808_s14, 0 }
  0x13   : > { %s3393_s16 = smov (%p39_p0, %s38_s16), 0  ;;  %p134_p4 = scmp.ne.s32.totalorder %s2792_s10, %s2788_s30 }
  0x14   : > { %3372 = sst [smem:[#allocation18_spill]] %s3393_s16  ;;  %p130_p3 = por %p129_p2, %p128_p1 }
  0x15   : > { %s118_s18 = ssub.s32 %s2804_s13, %s3393_s16  ;;  %p135_p5 = scmp.eq.s32.totalorder %s2903_s15, 0 }
  0x16   : > { %p119_p6 = scmp.eq.s32.totalorder %s118_s18, 0  ;;  %p2445_p8 = scmp.lt.s32.totalorder %s2808_s14, 2 }
  0x17   : > { %p2916_p7 = por %p135_p5, %p134_p4  ;;  %s2925_s21 = sand.u32 1, %s2796_s11  }
  0x18   : > { %s2922_s20 = scalar_select %p119_p6, %s2796_s11, %s121_s17  }
  0x19   : > { %p2927_p9 = pnand %p2445_p8, %p130_p3  ;;  %s362_s23 = sand.u32 1, %s2808_s14  }
  0x1a   : > { %3374 = sst [smem:[#allocation19_spill]] %s2922_s20  ;;  %s2056_s24 = sshll.u32 %s2925_s21, 6 }
  0x1b   : > { %s2349_s25 = sshll.u32 %s2804_s13, 6  ;;  %s3376_s5 = sld [smem:[#allocation23_spill]] }
  0x1c   : > { %s366_s29 = scalar_lea.vmem [#allocation6], %s2056_s24  ;;  %p2065_p10 = scmp.ge.s32.totalorder %s2808_s14, 1 }
  0x1d   : > { %s374_s30 = sshll.u32 %s366_s29, 4  ;;  %s2938_s18 = scalar_lea.sflag [#allocation7], %s362_s23  ;;  %s375_s30 = int_to_ptr.vmem [resolvable:$true] %s374_s30 }
  0x1e   : > { %s3360_s16 = smov 64   ;;  %s3361_s20 = smov 4  }
  0x1f   : > { %p433_p11 = scmp.lt.s32.totalorder %s2808_s14, 3  ;;  %s2417_s26 = smul.u32 192, %s2804_s13 }
  0x20   : > { %s3378_s3 = sld [smem:[#allocation22_spill]]  ;;  %s2350_s14 = sshll.u32 %s2804_s13, 7 }
  0x21   : > { %s371_s28 = scalar_lea.hbm %s3376_s5, %s2349_s25  ;;  %p2947_p12 = pnand %p2065_p10, %p433_p11 }
  0x22   : > { %s372_s17 = sshll.u32 %s371_s28, 4  ;;  %s2416_s25 = smul.u32 192, %s2925_s21  ;;  %s373_s17 = int_to_ptr.hbm [resolvable:$true] %s372_s17 }
  0x23   : > { %2438 = dma.hbm_to_vmem [thread:$0]  (!%p2927_p9), %s373_s17, 1024, %s375_s30, %s2938_s18, %s3360_s16, %s3360_s16, %s3361_s20  }
  0x24   : > { %s337_s29 = scalar_lea.vmem [#allocation3], %s2416_s25  ;;  %s2059_s30 = sshll.u32 %s2925_s21, 7 }
  0x25   : > { %s345_s5 = sshll.u32 %s337_s29, 4  ;;  %s334_s17 = scalar_lea.sflag [#allocation4], %s2925_s21  ;;  %s346_s5 = int_to_ptr.vmem [resolvable:$true] %s345_s5 }
  0x26   : > { %s342_s28 = scalar_lea.hbm %s3378_s3, %s2417_s26  ;;  %s2812_s16 = smov 192  }
  0x27   : > { %s343_s11 = sshll.u32 %s342_s28, 4  ;;  %s2813_s20 = smov 12   ;;  %s344_s11 = int_to_ptr.hbm [resolvable:$true] %s343_s11 }
  0x28   : > { %2435 = dma.hbm_to_vmem [thread:$0]  (!%p2927_p9), %s344_s11, 3072, %s346_s5, %s334_s17, %s2812_s16, %s2812_s16, %s2813_s20  }
  0x29   : > { %s393_s27 = scalar_lea.hbm %s3354_s6, %s2350_s14  ;;  %s388_s25 = scalar_lea.vmem [#allocation8], %s2059_s30 }
  0x2a   : > { %s396_s26 = sshll.u32 %s388_s25, 4  ;;  %s394_s23 = sshll.u32 %s393_s27, 4  ;;  %s397_s26 = int_to_ptr.vmem [resolvable:$true] %s396_s26  ;;  %s395_s23 = int_to_ptr.hbm [resolvable:$true] %s394_s23 }
  0x2b   : > { %s2814_s28 = smov 128   ;;  %s2815_s29 = smov 8  }
  0x2c   : > { %2441 = dma.hbm_to_vmem [thread:$0]  (!%p2927_p9), %s395_s23, 2048, %s397_s26, %s2938_s18, %s2814_s28, %s2814_s28, %s2815_s29  }
  0x2d   : > { %s422_s5 = scalar_lea.hbm %s3356_s8, %s2350_s14  ;;  %s417_s16 = scalar_lea.vmem [#allocation9], %s2059_s30 }
  0x2e   : > { %s423_s11 = sshll.u32 %s422_s5, 4  ;;  %s425_s20 = sshll.u32 %s417_s16, 4  ;;  %s424_s11 = int_to_ptr.hbm [resolvable:$true] %s423_s11  ;;  %s426_s20 = int_to_ptr.vmem [resolvable:$true] %s425_s20 }
  0x2f   : > { %s414_s1 = scalar_lea.sflag [#allocation10], %s2925_s21  ;;  %s3379_s9 = smov 4  }
  0x30   : > { %s3380_s17 = smov 64   ;;  %437 = sbr.rel (%p2947_p12) target bundleno = 2288 (0x8f0), region = 56 }
  0x31   : > { %2444 = dma.hbm_to_vmem [thread:$0]  (!%p2927_p9), %s424_s11, 2048, %s426_s20, %s414_s1, %s3380_s17, %s3380_s17, %s3379_s9  }
  0x32   : > { %s439_s18 = sand.u32 (!%p2947_p12), 1, %s2792_s10  }
  0x33   : > { %s2418_s27 = smul.u32 (!%p2947_p12), 192, %s439_s18  ;;  %s440_s0 = scalar_lea.sflag (!%p2947_p12), [#allocation4], %s439_s18 }
  0x35   : > { %s2979_s3 = scalar_lea.vmem [#allocation3], %s2418_s27 }
  0x36   : > { %2771 = dma.done.wait (%p2916_p7), %s440_s0, 3072  }
  0x37   : > { %2773 = vsyncadd (%p2916_p7), %s440_s0, 4294964224  ;;  %s449_s14 = sand.u32 1, %s2903_s15   ;;  %s2066_s21 = sshll.u32 %s439_s18, 6 }
  0x38   : > { %s450_s22 = scalar_lea.sflag [#allocation7], %s449_s14  ;;  %s2986_s30 = scalar_lea.vmem [#allocation6], %s2066_s21 }
  0x39   : > { %2775 = dma.done.wait (%p2916_p7), %s450_s22, 3072  }
  0x3a   : > { %2777 = vsyncadd (%p2916_p7), %s450_s22, 4294964224  ;;  %s2067_s24 = sshll.u32 %s439_s18, 7  ;;  %s470_s26 = scalar_lea.sflag [#allocation10], %s439_s18 }
  0x3b   : > { %s2992_s25 = scalar_lea.vmem [#allocation8], %s2067_s24  ;;  %s2994_s23 = scalar_lea.vmem [#allocation9], %s2067_s24 }
  0x3c   : > { %2779 = dma.done.wait (%p2916_p7), %s470_s26, 2048  }
  0x3d   : > { %2781 = vsyncadd (%p2916_p7), %s470_s26, 4294965248  ;;  %p542_p13 = scmp.lt.s32.totalorder %s2800_s12, 1  ;;  %p2071_p0 = scmp.ne.s32.totalorder %s2800_s12, 0 }
  0x3e   : > { %s3381_s22 = sld [smem:[#allocation20_spill]] (!%p2071_p0) }
  0x3f   : > { %s543_s28 = scalar_select %p542_p13, %s2800_s12, 1 }
  0x40   : > { %559 = sbr.rel (%p2071_p0) target bundleno = 72 (0x48), region = 76 }
  0x41   : > { %s2069_s29 = sshll.u32 %s543_s28, 3  ;;  %s2419_s5 = smul.u32 3, %s543_s28 }
  0x42   : > { %s3005_s20 = scalar_lea.vmem %s3350_s2, %s2069_s29  ;;  %s2070_s1 = sshll.u32 %s543_s28, 1 }
  0x43   : > { %s3010_s18 = scalar_lea.vmem %s3352_s4, %s2419_s5  ;;  %s3015_s0 = scalar_lea.vmem %s3355_s7, %s2070_s1 }
  0x45   : > { %v560_v0 = vld [vmem:[%s3381_s22] sm:$0xff]  ;;  %v561_v1 = vld [vmem:[%s3381_s22 + $0x8] sm:$0xff] }
  0x46   : > { %562 = vst [vmem:[#allocation2] sm:$0xff] %v560_v0 }
  0x47   : > { %563 = vst [vmem:[#allocation2 + $0x8] sm:$0xff] %v561_v1 }
  0x48 PF: > { %v2816_v4 = vmov 128.0   ;;  %v2817_v19 = vmov 127.0   ;;  %v2158_v22 = vld [vmem:[%s2979_s3 + $0xa8] sm:$0xf]  ;;  %v2374_v23 = vld [vmem:[%s2979_s3 + $0xb0] sm:$0xf0] }
  0x49   : > { %2535 = vrcp.f32 %v2816_v4  ;;  %v2373_v24 = vld [vmem:[%s2979_s3 + $0xac] sm:$0xf]  ;;  %v2159_v25 = vor.u32 %v2374_v23, %v2158_v22  ;;  %v2160_v26 = vld [vmem:[%s2979_s3 + $0xb4] sm:$0xf0]  ;;  %v2166_v27 = vld [vmem:[%s2979_s3 + $0xb0] sm:$0xf] }
  0x4a   : > { %2537 = vrcp.f32 %v2817_v19  ;;  %v2375_v28 = vld [vmem:[%s2979_s3 + $0xb8] sm:$0xf0]  ;;  %v2163_v29 = vor.u32 %v2373_v24, %v2160_v26  ;;  %v2146_v32 = vld [vmem:[%s2979_s3 + $0x90] sm:$0xf]  ;;  %v2370_v34 = vld [vmem:[%s2979_s3 + $0x94] sm:$0xf] }
  0x4b   : > { %v2167_v30 = vor.u32 %v2375_v28, %v2166_v27  ;;  %802 = vmatpush.bf16.msra.mxu0 %v2159_v25  ;;  %v2371_v33 = vld [vmem:[%s2979_s3 + $0x98] sm:$0xf0]  ;;  %v2148_v36 = vld [vmem:[%s2979_s3 + $0x9c] sm:$0xf0]  ;;  %v2154_v37 = vld [vmem:[%s2979_s3 + $0x98] sm:$0xf] }
  0x4c   : > { %816 = vmatpush.bf16.msra.mxu1 %v2163_v29  ;;  %v2147_v35 = vor.u32 %v2371_v33, %v2146_v32  ;;  %v2372_v38 = vld [vmem:[%s2979_s3 + $0xa0] sm:$0xf0]  ;;  %v2151_v39 = vor.u32 %v2370_v34, %v2148_v36  ;;  %v2134_v41 = vld [vmem:[%s2979_s3 + $0x78] sm:$0xf]  ;;  %v2367_v43 = vld [vmem:[%s2979_s3 + $0x7c] sm:$0xf] }
  0x4d   : > { %v3024_v2 = vld [vmem:[#allocation2] sm:$0xff]  ;;  %830 = vmatpush.bf16.msra.mxu2 %v2167_v30  ;;  %v2155_v40 = vor.u32 %v2372_v38, %v2154_v37  ;;  %v2368_v42 = vld [vmem:[%s2979_s3 + $0x80] sm:$0xf0]  ;;  %v2136_v45 = vld [vmem:[%s2979_s3 + $0x84] sm:$0xf0]  ;;  %vm928_vm6 = vcmask 261120  }
  0x4e   : > { %567 = vadd.xlane.f32.xlu0 %v3024_v2  ;;  %v3027_v3 = vld [vmem:[#allocation2 + $0x8] sm:$0xff]  ;;  %v2135_v44 = vor.u32 %v2368_v42, %v2134_v41  ;;  %v2142_v46 = vld [vmem:[%s2979_s3 + $0x80] sm:$0xf]  ;;  %v2369_v47 = vld [vmem:[%s2979_s3 + $0x88] sm:$0xf0]  ;;  %v2139_v49 = vor.u32 %v2367_v43, %v2136_v45  ;;  %s2819_s28 = smov 96  }
  0x4f   : > { %v2536_v5 = vpop.eup %2535  ;;  %803 = vmatpush.bf16.msra.mxu0 %v2147_v35  ;;  %v2143_v50 = vor.u32 %v2369_v47, %v2142_v46  ;;  %v2122_v51 = vld [vmem:[%s2979_s3 + $0x60] sm:$0xf]  ;;  %v2365_v52 = vld [vmem:[%s2979_s3 + $0x68] sm:$0xf0]  ;;  %v2364_v53 = vld [vmem:[%s2979_s3 + $0x64] sm:$0xf] }
  0x50   : > { %v572_v6 = vmul.f32 128.0, %v2536_v5  ;;  %vm576_vm0 = vweird.f32 %v2536_v5  ;;  %v3044_v20 = vpop.eup %2537  ;;  %817 = vmatpush.bf16.msra.mxu1 %v2151_v39  ;;  %v2124_v54 = vld [vmem:[%s2979_s3 + $0x6c] sm:$0xf0]  ;;  %v2130_v55 = vld [vmem:[%s2979_s3 + $0x68] sm:$0xf]  ;;  %v2123_v57 = vor.u32 %v2365_v52, %v2122_v51  ;;  %vm1181_vm7 = vcmask 1043456  }
  0x51   : > { %v589_v21 = vmul.f32 127.0, %v3044_v20  ;;  %831 = vmatpush.bf16.msra.mxu2 %v2155_v40  ;;  %v2366_v56 = vld [vmem:[%s2979_s3 + $0x70] sm:$0xf0]  ;;  %v2127_v58 = vor.u32 %v2364_v53, %v2124_v54  ;;  %v2110_v60 = vld [vmem:[%s2979_s3 + $0x48] sm:$0xf]  ;;  %vm593_vm1 = vweird.f32 %v3044_v20  ;;  %s2820_s29 = smov 32  }
  0x52   : > { %v573_v7 = vsub.f32 1.0, %v572_v6  ;;  %v2131_v59 = vor.u32 %v2366_v56, %v2130_v55  ;;  %v2362_v61 = vld [vmem:[%s2979_s3 + $0x50] sm:$0xf0]  ;;  %v2361_v62 = vld [vmem:[%s2979_s3 + $0x4c] sm:$0xf]  ;;  %vm1081_vm8 = vcmask 64512  }
  0x53   : > { %v590_v31 = vsub.f32 1.0, %v589_v21  ;;  %804 = vmatpush.bf16.msra.mxu0 %v2135_v44  ;;  %v2112_v0 = vld [vmem:[%s2979_s3 + $0x54] sm:$0xf0]  ;;  %v2118_v1 = vld [vmem:[%s2979_s3 + $0x50] sm:$0xf]  ;;  %vm1344_vm9 = vcmask 523264  }
  0x54   : > { %v574_v8 = vmul.f32 %v2536_v5, %v573_v7  ;;  %818 = vmatpush.bf16.msra.mxu1 %v2139_v49  ;;  %v2363_v4 = vld [vmem:[%s2979_s3 + $0x58] sm:$0xf0]  ;;  %v2115_v6 = vor.u32 %v2361_v62, %v2112_v0  ;;  %v2086_v24 = vld [vmem:[%s2979_s3 + $0x18] sm:$0xf]  ;;  %v2088_v26 = vld [vmem:[%s2979_s3 + $0x24] sm:$0xf0] }
  0x55   : > { %v591_v48 = vmul.f32 %v3044_v20, %v590_v31  ;;  %832 = vmatpush.bf16.msra.mxu2 %v2143_v50  ;;  %v2119_v7 = vor.u32 %v2363_v4, %v2118_v1  ;;  %v2355_v25 = vld [vmem:[%s2979_s3 + $0x1c] sm:$0xf]  ;;  %v2094_v27 = vld [vmem:[%s2979_s3 + $0x20] sm:$0xf]  ;;  %v2357_v28 = vld [vmem:[%s2979_s3 + $0x28] sm:$0xf0] }
  0x56   : > { %569 = vadd.xlane.f32.xlu0 %v3027_v3  ;;  %v575_v9 = vadd.f32 %v2536_v5, %v574_v8  ;;  %v2098_v8 = vld [vmem:[%s2979_s3 + $0x30] sm:$0xf]  ;;  %v2091_v30 = vor.u32 %v2355_v25, %v2088_v26  ;;  %v2095_v31 = vor.u32 %v2357_v28, %v2094_v27  ;;  %v2074_v32 = vld [vmem:[%s2979_s3] sm:$0xf]  ;;  %v2353_v33 = vld [vmem:[%s2979_s3 + $0x8] sm:$0xf0] }
  0x57   : > { %v592_v63 = vadd.f32 %v3044_v20, %v591_v48  ;;  %805 = vmatpush.bf16.msra.mxu0 %v2123_v57  ;;  %v2352_v34 = vld [vmem:[%s2979_s3 + $0x4] sm:$0xf]  ;;  %v2076_v35 = vld [vmem:[%s2979_s3 + $0xc] sm:$0xf0]  ;;  %v2082_v36 = vld [vmem:[%s2979_s3 + $0x8] sm:$0xf]  ;;  %v2075_v39 = vor.u32 %v2353_v33, %v2074_v32 }
  0x58   : > { %v3030_v10 = vsel %vm576_vm0, %v2536_v5, %v575_v9  ;;  %v2111_v5 = vor.u32 %v2362_v61, %v2110_v60  ;;  %819 = vmatpush.bf16.msra.mxu1 %v2127_v58  ;;  %v2359_v9 = vld [vmem:[%s2979_s3 + $0x38] sm:$0xf0]  ;;  %v2354_v37 = vld [vmem:[%s2979_s3 + $0x10] sm:$0xf0]  ;;  %v2079_v42 = vor.u32 %v2352_v34, %v2076_v35  ;;  %vm1346_vm10 = vcmask 785408   ;;  %p2344_p1 = scmp.ne.s32.totalorder %s2800_s12, 1 }
  0x59   : > { %833 = vmatpush.bf16.msra.mxu2 %v2131_v59  ;;  %v2099_v19 = vor.u32 %v2359_v9, %v2098_v8  ;;  %v2083_v43 = vor.u32 %v2354_v37, %v2082_v36  ;;  %v3104_v62 = vld [vmem:[%s3005_s20] sm:$0x3f] }
  0x5a   : > { %v625_v4 = vperm.slane %v3104_v62, 0  ;;  %v630_v9 = vperm.slane %v3104_v62, 1 }
  0x5b   : > { %806 = vmatpush.bf16.msra.mxu0 %v2111_v5 }
  0x5c   : > { %820 = vmatpush.bf16.msra.mxu1 %v2115_v6 }
  0x5d   : > { %834 = vmatpush.bf16.msra.mxu2 %v2119_v7 }
  0x5f   : > { %807 = vmatpush.bf16.msra.mxu0 %v2099_v19  ;;  %v666_v19 = vld [vmem:[%s3010_s18] sm:$0x7] }
  0x60   : > { %v670_v25 = vperm.slane %v666_v19, 2 }
  0xc1   : > { %v568_v11 = vpop.xlane.xlu0 %567 }
  0xc2   : > { %v578_v12 = vmul.f32 %v3030_v10, %v568_v11  ;;  %v2358_v11 = vld [vmem:[%s2979_s3 + $0x34] sm:$0xf] }
  0xc4   : > { %v3034_v13 = vsub.f32 %v3024_v2, %v578_v12  ;;  %v3084_v12 = vsel %vm593_vm1, %v3044_v20, %v592_v63  ;;  %v2356_v20 = vld [vmem:[%s2979_s3 + $0x20] sm:$0xf0] }
  0xc5   : > { %v2087_v29 = vor.u32 %v2356_v20, %v2086_v24 }
  0xc6   : > { %v582_v14 = vmul.f32 %v3034_v13, %v3034_v13  ;;  %v626_v6 = vmul.f32 %v625_v4, %v3034_v13 }
  0xc7   : > { %808 = vmatpush.bf16.msra.mxu0 %v2087_v29 }
  0xc8   : > { %584 = vadd.xlane.f32.xlu1 %v582_v14  ;;  %v2100_v14 = vld [vmem:[%s2979_s3 + $0x3c] sm:$0xf0] }
  0xc9   : > { %v570_v15 = vpop.xlane.xlu0 %569  ;;  %v2103_v22 = vor.u32 %v2358_v11, %v2100_v14 }
  0xca   : > { %v579_v16 = vmul.f32 %v3030_v10, %v570_v15  ;;  %v2106_v15 = vld [vmem:[%s2979_s3 + $0x38] sm:$0xf] }
  0xcb   : > { %821 = vmatpush.bf16.msra.mxu1 %v2103_v22  ;;  %809 = vmatpush.bf16.msra.mxu0 %v2075_v39  ;;  %v669_v22 = vperm.slane %v666_v19, 1 }
  0xcc   : > { %v3040_v17 = vsub.f32 %v3027_v3, %v579_v16  ;;  %v2360_v16 = vld [vmem:[%s2979_s3 + $0x40] sm:$0xf0]  ;;  %s2818_s3 = smov 64  }
  0xcd   : > { %v2107_v23 = vor.u32 %v2360_v16, %v2106_v15 }
  0xce   : > { %v583_v18 = vmul.f32 %v3040_v17, %v3040_v17  ;;  %v627_v7 = vmul.f32 %v625_v4, %v3040_v17 }
  0xcf   : > { %835 = vmatpush.bf16.msra.mxu2 %v2107_v23  ;;  %822 = vmatpush.bf16.msra.mxu1 %v2091_v30 }
  0xd0   : > { %586 = vadd.xlane.f32.xlu1 %v583_v18 }
  0xd3   : > { %836 = vmatpush.bf16.msra.mxu2 %v2095_v31  ;;  %823 = vmatpush.bf16.msra.mxu1 %v2079_v42 }
  0xd7   : > { %837 = vmatpush.bf16.msra.mxu2 %v2083_v43 }
 0x13b   : > { %v585_v18 = vpop.xlane.xlu1 %584 }
 0x13c   : > { %v595_v21 = vmul.f32 %v3084_v12, %v585_v18 }
 0x13e   : > { %2539 = vrsqrt.f32 %v595_v21  ;;  %vm604_vm2 = vcmp.eq.f32.partialorder %v595_v21, inf  ;;  %v607_v53 = vand.u32 2147483648, %v595_v21  ;;  %vm606_vm3 = vcmp.eq.f32.partialorder %v595_v21, 0.0 }
 0x143   : > { %v587_v38 = vpop.xlane.xlu1 %586 }
 0x144   : > { %v2540_v40 = vpop.eup %2539  ;;  %v596_v41 = vmul.f32 %v3084_v12, %v587_v38 }
 0x145   : > { %v598_v44 = vmul.f32 %v2540_v40, %v595_v21 }
 0x146   : > { %2541 = vrsqrt.f32 %v596_v41  ;;  %vm616_vm4 = vcmp.eq.f32.partialorder %v596_v41, inf  ;;  %v619_v61 = vand.u32 2147483648, %v596_v41  ;;  %vm618_vm5 = vcmp.eq.f32.partialorder %v596_v41, 0.0 }
 0x147   : > { %v599_v45 = vmul.f32 %v2540_v40, %v598_v44 }
 0x149   : > { %v600_v46 = vmul.f32 0.5, %v599_v45 }
 0x14b   : > { %v601_v47 = vsub.f32 1.5, %v600_v46 }
 0x14c   : > { %v2542_v48 = vpop.eup %2541 }
 0x14d   : > { %v610_v49 = vmul.f32 %v2542_v48, %v596_v41  ;;  %v602_v50 = vmul.f32 %v2540_v40, %v601_v47 }
 0x14f   : > { %v611_v51 = vmul.f32 %v2542_v48, %v610_v49  ;;  %v603_v52 = vmul.f32 %v602_v50, %v595_v21 }
 0x151   : > { %v605_v54 = vsel %vm604_vm2, %v595_v21, %v603_v52  ;;  %v612_v55 = vmul.f32 0.5, %v611_v51  ;;  %v668_v21 = vperm.slane %v666_v19, 0 }
 0x152   : > { %v608_v56 = vsel %vm606_vm3, %v607_v53, %v605_v54 }
 0x153   : > { %v613_v57 = vsub.f32 1.5, %v612_v55  ;;  %v621_v59 = vadd.f32 1e-06, %v608_v56 }
 0x155   : > { %v614_v58 = vmul.f32 %v2542_v48, %v613_v57  ;;  %2543 = vrcp.f32 %v621_v59 }
 0x157   : > { %v615_v60 = vmul.f32 %v614_v58, %v596_v41 }
 0x159   : > { %v617_v63 = vsel %vm616_vm4, %v596_v41, %v615_v60 }
 0x15a   : > { %v620_v0 = vsel %vm618_vm5, %v619_v61, %v617_v63 }
 0x15b   : > { %v622_v1 = vadd.f32 1e-06, %v620_v0  ;;  %v2544_v5 = vpop.eup %2543 }
 0x15c   : > { %v628_v8 = vmul.f32 %v2544_v5, %v626_v6 }
 0x15d   : > { %2545 = vrcp.f32 %v622_v1 }
 0x15e   : > { %v631_v15 = vadd.f32 %v630_v9, %v628_v8 }
 0x163   : > { %v2546_v11 = vpop.eup %2545 }
 0x164   : > { %v629_v14 = vmul.f32 %v2546_v11, %v627_v7 }
 0x166   : > { %v632_v16 = vadd.f32 %v630_v9, %v629_v14 }
 0x168   : > { %v633_v18 = vpack.c.bf16 %v632_v16, %v631_v15 }
 0x16a   : > { %810 = vmatmul.bf16.vlgmr.msra.gmra.mxu0 %v633_v18  ;;  %824 = vmatmul.bf16.vlgmr.msra.gmra.mxu1 %v633_v18 }
 0x16b   : > { %838 = vmatmul.bf16.vlgmr.msra.gmra.mxu2 %v633_v18 }
 0x1e7   : > { %v811_v23 = vpop.f32.mrf.mxu0  ;;  %v825_v24 = vpop.f32.mrf.mxu1 }
 0x1e8   : > { %v812_v20 = vadd.f32 %v811_v23, %v668_v21  ;;  %v826_v13 = vadd.f32 %v825_v24, %v669_v22 }
 0x1ea   : > { %876 = vrot.lane.b32.xlu0 %v826_v13, %s2818_s3  ;;  %873 = vrot.lane.b32.xlu2 %v826_v13, %s2819_s28  ;;  %v892_v17 = vpack.c.bf16 %v826_v13, %v826_v13  ;;  %v864_v34 = vpack.c.bf16 %v812_v20, %v812_v20 }
 0x1eb   : > { %848 = vrot.lane.b32.xlu1 %v812_v20, %s2818_s3 }
 0x1ec   : > { %v933_v26 = vsel %vm928_vm6, %v892_v17, 0 }
 0x1ed   : > { %942 = vmatpush.bf16.xpose.msra.mxu3 %v933_v26 }
 0x1ee   : > { %v839_v27 = vpop.f32.mrf.mxu2 }
 0x1ef   : > { %v3115_v28 = vadd.f32 %v839_v27, %v670_v25  ;;  %v813_v29 = vpop.f32.mrf.mxu0  ;;  %v827_v30 = vpop.f32.mrf.mxu1 }
 0x1f0   : > { %v814_v31 = vadd.f32 %v813_v29, %v668_v21  ;;  %v828_v32 = vadd.f32 %v827_v30, %v669_v22 }
 0x1f1   : > { %v920_v33 = vpack.c.bf16 %v3115_v28, %v3115_v28 }
 0x1f2   : > { %851 = vrot.lane.b32.xlu0 %v812_v20, %s2820_s29  ;;  %845 = vrot.lane.b32.xlu2 %v812_v20, %s2819_s28  ;;  %v896_v35 = vpack.c.bf16 %v828_v32, %v828_v32  ;;  %v868_v41 = vpack.c.bf16 %v814_v31, %v814_v31 }
 0x1f3   : > { %858 = vrot.lane.b32.xlu1 %v814_v31, %s2818_s3  ;;  %v1183_v36 = vsel %vm1181_vm7, %v920_v33, 0 }
 0x1f4   : > { %1192 = vmatpush.bf16.msrb.mxu1 %v1183_v36  ;;  %2168 = vmatmul.msk.bf16.vlgmr.msra.gmra.mxu3 %vm928_vm6, %v864_v34  ;;  %v1009_v37 = vsel %vm928_vm6, %v896_v35, 0 }
 0x1f5   : > { %1018 = vmatpush.bf16.xpose.msrb.mxu2 %v1009_v37 }
 0x1f6   : > { %v841_v38 = vpop.f32.mrf.mxu2 }
 0x1f7   : > { %v3125_v39 = vadd.f32 %v841_v38, %v670_v25 }
 0x1f9   : > { %v924_v40 = vpack.c.bf16 %v3125_v39, %v3125_v39 }
 0x1fa   : > { %889 = vrot.lane.b32.xlu0 %v828_v32, %s2820_s29  ;;  %879 = vrot.lane.b32.xlu2 %v826_v13, %s2820_s29 }
 0x1fb   : > { %v1259_v42 = vsel %vm1181_vm7, %v924_v40, 0  ;;  %v2510_v40 = vpack.i.bf16 %v3125_v39, %v3115_v28 }
 0x1fc   : > { %1268 = vmatpush.bf16.msra.mxu1 %v1259_v42  ;;  %2172 = vmatmul.msk.bf16.vlgmr.msrb.gmra.mxu2 %vm928_vm6, %v868_v41 }
 0x202   : > { %883 = vrot.lane.b32.xlu2 %v828_v32, %s2819_s28 }
 0x20a   : > { %886 = vrot.lane.b32.xlu2 %v828_v32, %s2818_s3 }
 0x212   : > { %855 = vrot.lane.b32.xlu2 %v814_v31, %s2819_s28 }
 0x21a   : > { %861 = vrot.lane.b32.xlu2 %v814_v31, %s2820_s29 }
 0x244   : > { %v874_v43 = vpop.permute.xlu2 %873 }
 0x245   : > { %v893_v44 = vpack.c.bf16 %v874_v43, %v874_v43 }
 0x247   : > { %v952_v45 = vsel %vm928_vm6, %v893_v44, 0 }
 0x248   : > { %961 = vmatpush.bf16.xpose.msrb.mxu3 %v952_v45 }
 0x24c   : > { %v846_v46 = vpop.permute.xlu2 %845 }
 0x24d   : > { %v865_v47 = vpack.c.bf16 %v846_v46, %v846_v46 }
 0x24f   : > { %2169 = vmatmul.msk.bf16.vlgmr.msrb.gmra.mxu3 %vm928_vm6, %v865_v47 }
 0x254   : > { %v880_v48 = vpop.permute.xlu2 %879 }
 0x255   : > { %v895_v49 = vpack.c.bf16 %v880_v48, %v880_v48 }
 0x257   : > { %v990_v50 = vsel %vm928_vm6, %v895_v49, 0 }
 0x258   : > { %999 = vmatpush.bf16.xpose.msrb.mxu0 %v990_v50 }
 0x25c   : > { %v877_v51 = vpop.permute.xlu0 %876  ;;  %v884_v52 = vpop.permute.xlu2 %883 }
 0x25d   : > { %v894_v53 = vpack.c.bf16 %v877_v51, %v877_v51  ;;  %v897_v54 = vpack.c.bf16 %v884_v52, %v884_v52  ;;  %v849_v57 = vpop.permute.xlu1 %848 }
 0x25e   : > { %v866_v60 = vpack.c.bf16 %v849_v57, %v849_v57 }
 0x25f   : > { %v971_v55 = vsel %vm928_vm6, %v894_v53, 0  ;;  %v1028_v56 = vsel %vm928_vm6, %v897_v54, 0 }
 0x260   : > { %980 = vmatpush.bf16.xpose.msra.mxu3 %v971_v55  ;;  %1037 = vmatpush.bf16.xpose.msra.mxu2 %v1028_v56 }
 0x264   : > { %v852_v58 = vpop.permute.xlu0 %851  ;;  %v887_v59 = vpop.permute.xlu2 %886 }
 0x265   : > { %v867_v61 = vpack.c.bf16 %v852_v58, %v852_v58  ;;  %v898_v63 = vpack.c.bf16 %v887_v59, %v887_v59  ;;  %v859_v8 = vpop.permute.xlu1 %858 }
 0x266   : > { %v870_v11 = vpack.c.bf16 %v859_v8, %v859_v8 }
 0x267   : > { %v1047_v0 = vsel %vm928_vm6, %v898_v63, 0  ;;  %2170 = vmatmul.msk.bf16.vlgmr.msra.gmra.mxu3 %vm928_vm6, %v866_v60  ;;  %2171 = vmatmul.msk.bf16.vlgmr.msrb.gmra.mxu0 %vm928_vm6, %v867_v61 }
 0x268   : > { %1056 = vmatpush.bf16.xpose.msrb.mxu3 %v1047_v0 }
 0x26c   : > { %v890_v1 = vpop.permute.xlu0 %889  ;;  %v856_v4 = vpop.permute.xlu2 %855 }
 0x26d   : > { %v899_v5 = vpack.c.bf16 %v890_v1, %v890_v1  ;;  %v869_v6 = vpack.c.bf16 %v856_v4, %v856_v4 }
 0x26f   : > { %v1066_v7 = vsel %vm928_vm6, %v899_v5, 0  ;;  %2173 = vmatmul.msk.bf16.vlgmr.msra.gmra.mxu2 %vm928_vm6, %v869_v6 }
 0x270   : > { %1075 = vmatpush.bf16.xpose.msra.mxu0 %v1066_v7 }
 0x274   : > { %v862_v9 = vpop.permute.xlu2 %861 }
 0x275   : > { %v871_v14 = vpack.c.bf16 %v862_v9, %v862_v9 }
 0x277   : > { %v3147_v15 = vpop.f32.mrf.mxu3  ;;  %2174 = vmatmul.msk.bf16.vlgmr.msrb.gmra.mxu3 %vm928_vm6, %v870_v11  ;;  %2175 = vmatmul.msk.bf16.vlgmr.msra.gmra.mxu0 %vm928_vm6, %v871_v14 }
 0x278   : > { %v1082_v16 = vsel %vm1081_vm8, %v3147_v15, -inf }
 0x279   : > { %1083 = vmax.xlane.f32.xlu1 %v1082_v16 }
 0x27f   : > { %v946_v18 = vpop.f32.mrf.mxu3  ;;  %v3153_v19 = vpop.f32.mrf.mxu2 }
 0x280   : > { %v1094_v37 = vsel %vm1081_vm8, %v3153_v19, -inf }
 0x287   : > { %v1022_v21 = vpop.f32.mrf.mxu2 }
 0x2d2   : > { %v963_v22 = vpop.f32.mrf.mxu3 }
 0x2d3   : > { %v1085_v23 = vsel %vm1081_vm8, %v963_v22, -inf }
 0x2d4   : > { %1086 = vmax.xlane.f32.xlu1 %v1085_v23 }
 0x2da   : > { %v965_v24 = vpop.f32.mrf.mxu3 }
 0x2e4   : > { %v1001_v20 = vpop.f32.mrf.mxu0 }
 0x2e5   : > { %v1091_v13 = vsel %vm1081_vm8, %v1001_v20, -inf }
 0x2e6   : > { %1092 = vmax.xlane.f32.xlu2 %v1091_v13 }
 0x2ea   : > { %v982_v17 = vpop.f32.mrf.mxu3 }
 0x2eb   : > { %v1088_v25 = vsel %vm1081_vm8, %v982_v17, -inf }
 0x2ec   : > { %v1003_v26 = vpop.f32.mrf.mxu0  ;;  %1089 = vmax.xlane.f32.xlu0 %v1088_v25  ;;  %v1084_v41 = vpop.xlane.xlu1 %1083 }
 0x2ed   : > { %v1106_v1 = vsub.f32 %v3147_v15, %v1084_v41 }
 0x2ef   : > { %v1114_v6 = vmul.f32 1.442695, %v1106_v1 }
 0x2f2   : > { %v984_v27 = vpop.f32.mrf.mxu3  ;;  %v1039_v29 = vpop.f32.mrf.mxu2 }
 0x2f3   : > { %v1097_v30 = vsel %vm1081_vm8, %v1039_v29, -inf }
 0x2f4   : > { %v3159_v31 = vpop.f32.mrf.mxu0  ;;  %1098 = vmax.xlane.f32.xlu1 %v1097_v30 }
 0x2f5   : > { %v1103_v32 = vsel %vm1081_vm8, %v3159_v31, -inf }
 0x2f6   : > { %1104 = vmax.xlane.f32.xlu2 %v1103_v32 }
 0x2fa   : > { %v1041_v33 = vpop.f32.mrf.mxu2  ;;  %v1058_v34 = vpop.f32.mrf.mxu3 }
 0x2fb   : > { %v1100_v35 = vsel %vm1081_vm8, %v1058_v34, -inf }
 0x2fc   : > { %v1079_v36 = vpop.f32.mrf.mxu0  ;;  %1101 = vmax.xlane.f32.xlu0 %v1100_v35 }
 0x2fe   : > { %1095 = vmax.xlane.f32.xlu2 %v1094_v37 }
 0x302   : > { %v1060_v38 = vpop.f32.mrf.mxu3 }
 0x30d   : > { %2511 = vrot.lane.b32.xlu1 %v2510_v40, %s2819_s28 }
 0x310   : > { %2516 = vrot.lane.b32.xlu0 %v2510_v40, %s2818_s3 }
 0x347   : > { %v1087_v42 = vpop.xlane.xlu1 %1086 }
 0x348   : > { %v1107_v43 = vsub.f32 %v963_v22, %v1087_v42 }
 0x34a   : > { %v1116_v44 = vmul.f32 1.442695, %v1107_v43 }
 0x34c   : > { %2547 = vpow2.f32 %v1116_v44 }
 0x352   : > { %v3170_v45 = vpop.eup %2547 }
 0x353   : > { %v1133_v46 = vsel %vm1081_vm8, %v3170_v45, 0.0 }
 0x354   : > { %1134 = vadd.xlane.f32.xlu0 %v1133_v46 }
 0x359   : > { %v1093_v47 = vpop.xlane.xlu2 %1092 }
 0x35a   : > { %v1109_v48 = vsub.f32 %v1001_v20, %v1093_v47 }
 0x35c   : > { %v1120_v49 = vmul.f32 1.442695, %v1109_v48 }
 0x35e   : > { %2549 = vpow2.f32 %v1120_v49 }
 0x35f   : > { %v1090_v50 = vpop.xlane.xlu0 %1089 }
 0x360   : > { %v1108_v51 = vsub.f32 %v982_v17, %v1090_v50 }
 0x362   : > { %v1118_v52 = vmul.f32 1.442695, %v1108_v51 }
 0x364   : > { %v3174_v53 = vpop.eup %2549  ;;  %2551 = vpow2.f32 %v1118_v52 }
 0x365   : > { %v1139_v54 = vsel %vm1081_vm8, %v3174_v53, 0.0 }
 0x366   : > { %1140 = vadd.xlane.f32.xlu2 %v1139_v54 }
 0x367   : > { %v1099_v55 = vpop.xlane.xlu1 %1098 }
 0x368   : > { %v1111_v56 = vsub.f32 %v1039_v29, %v1099_v55 }
 0x369   : > { %v1105_v59 = vpop.xlane.xlu2 %1104 }
 0x36a   : > { %v3178_v57 = vpop.eup %2551  ;;  %v1124_v58 = vmul.f32 1.442695, %v1111_v56 }
 0x36b   : > { %v1136_v60 = vsel %vm1081_vm8, %v3178_v57, 0.0 }
 0x36c   : > { %2553 = vpow2.f32 %v1124_v58 }
 0x36e   : > { %1137 = vadd.xlane.f32.xlu2 %v1136_v60 }
 0x36f   : > { %v1102_v61 = vpop.xlane.xlu0 %1101 }
 0x370   : > { %v1112_v63 = vsub.f32 %v1058_v34, %v1102_v61  ;;  %v1113_v34 = vsub.f32 %v3159_v31, %v1105_v59 }
 0x371   : > { %v1096_v7 = vpop.xlane.xlu2 %1095 }
 0x372   : > { %v3182_v0 = vpop.eup %2553  ;;  %v1126_v4 = vmul.f32 1.442695, %v1112_v63  ;;  %v1110_v9 = vsub.f32 %v3153_v19, %v1096_v7  ;;  %v1128_v35 = vmul.f32 1.442695, %v1113_v34 }
 0x373   : > { %v1145_v5 = vsel %vm1081_vm8, %v3182_v0, 0.0 }
 0x374   : > { %2555 = vpow2.f32 %v1126_v4  ;;  %1146 = vadd.xlane.f32.xlu0 %v1145_v5  ;;  %v1122_v14 = vmul.f32 1.442695, %v1110_v9 }
 0x375   : > { %2557 = vpow2.f32 %v1114_v6 }
 0x376   : > { %2559 = vpow2.f32 %v1122_v14 }
 0x377   : > { %2561 = vpow2.f32 %v1128_v35 }
 0x37a   : > { %v3187_v8 = vpop.eup %2555 }
 0x37b   : > { %v1148_v11 = vsel %vm1081_vm8, %v3187_v8, 0.0  ;;  %v3192_v15 = vpop.eup %2557 }
 0x37c   : > { %1149 = vadd.xlane.f32.xlu1 %v1148_v11  ;;  %v1130_v17 = vsel %vm1081_vm8, %v3192_v15, 0.0  ;;  %v2560_v32 = vpop.eup %2559 }
 0x37d   : > { %v1142_v33 = vsel %vm1081_vm8, %v2560_v32, 0.0  ;;  %v2562_v36 = vpop.eup %2561 }
 0x37f   : > { %v2512_v16 = vpop.permute.xlu1 %2511 }
 0x380   : > { %v2514_v18 = vunpack.i.h.bf16 %v2512_v16  ;;  %v2513_v21 = vunpack.i.l.bf16 %v2512_v16 }
 0x382   : > { %v925_v22 = vpack.c.bf16 %v2514_v18, %v2514_v18  ;;  %v921_v23 = vpack.c.bf16 %v2513_v21, %v2513_v21  ;;  %v2517_v24 = vpop.permute.xlu0 %2516 }
 0x383   : > { %v2519_v20 = vunpack.i.h.bf16 %v2517_v24  ;;  %v2518_v13 = vunpack.i.l.bf16 %v2517_v24 }
 0x384   : > { %1131 = vadd.xlane.f32.xlu1 %v1130_v17  ;;  %v1202_v19 = vsel %vm1181_vm7, %v921_v23, 0  ;;  %v1278_v25 = vsel %vm1181_vm7, %v925_v22, 0 }
 0x385   : > { %v926_v26 = vpack.c.bf16 %v2519_v20, %v2519_v20  ;;  %v922_v27 = vpack.c.bf16 %v2518_v13, %v2518_v13  ;;  %1211 = vmatpush.bf16.msrb.mxu2 %v1202_v19 }
 0x386   : > { %907 = vrot.lane.b32.xlu2 %v3115_v28, %s2820_s29  ;;  %v1151_v28 = vsel %vm1081_vm8, %v2562_v36, 0.0 }
 0x387   : > { %v1221_v29 = vsel %vm1181_vm7, %v922_v27, 0  ;;  %v1297_v30 = vsel %vm1181_vm7, %v926_v26, 0 }
 0x388   : > { %917 = vrot.lane.b32.xlu0 %v3125_v39, %s2820_s29  ;;  %1230 = vmatpush.bf16.msra.mxu3 %v1221_v29 }
 0x389   : > { %1287 = vmatpush.bf16.msra.mxu2 %v1278_v25 }
 0x38c   : > { %1306 = vmatpush.bf16.msrb.mxu3 %v1297_v30  ;;  %1143 = vadd.xlane.f32.xlu1 %v1142_v33 }
 0x3af   : > { %1152 = vadd.xlane.f32.xlu2 %v1151_v28  ;;  %v2382_v28 = vld [vmem:[%s2986_s30 + $0x30] sm:$0xff] }
 0x3c7   : > { %v1135_v37 = vpop.xlane.xlu0 %1134 }
 0x3c8   : > { %2563 = vrcp.f32 %v1135_v37  ;;  %v2381_v37 = vld [vmem:[%s2986_s30 + $0x28] sm:$0xff] }
 0x3ce   : > { %v2564_v38 = vpop.eup %2563 }
 0x3cf   : > { %v1163_v40 = vmul.f32 %v2564_v38, %v3170_v45  ;;  %v2380_v38 = vld [vmem:[%s2986_s30 + $0x20] sm:$0xff] }
 0x3d1   : > { %v1171_v41 = vpack.c.bf16 %v1163_v40, %v1163_v40  ;;  %v2379_v40 = vld [vmem:[%s2986_s30 + $0x18] sm:$0xff] }
 0x3d3   : > { %2177 = vmatmul.msk.bf16.vlgmr.msrb.gmra.mxu2 %vm1081_vm8, %v1171_v41  ;;  %v2378_v41 = vld [vmem:[%s2986_s30 + $0x10] sm:$0xff] }
 0x3d9   : > { %v1141_v39 = vpop.xlane.xlu2 %1140 }
 0x3da   : > { %2565 = vrcp.f32 %v1141_v39  ;;  %v2377_v39 = vld [vmem:[%s2986_s30 + $0x8] sm:$0xff] }
 0x3e0   : > { %v2566_v43 = vpop.eup %2565 }
 0x3e1   : > { %v1138_v42 = vpop.xlane.xlu2 %1137  ;;  %v1165_v48 = vmul.f32 %v2566_v43, %v3174_v53 }
 0x3e2   : > { %2567 = vrcp.f32 %v1138_v42  ;;  %v2376_v42 = vld [vmem:[%s2986_s30] sm:$0xff] }
 0x3e3   : > { %v1173_v52 = vpack.c.bf16 %v1165_v48, %v1165_v48 }
 0x3e7   : > { %v1147_v31 = vpop.xlane.xlu0 %1146 }
 0x3e8   : > { %v2568_v44 = vpop.eup %2567  ;;  %2569 = vrcp.f32 %v1147_v31 }
 0x3e9   : > { %v1164_v46 = vmul.f32 %v2568_v44, %v3178_v57  ;;  %v908_v47 = vpop.permute.xlu2 %907 }
 0x3ea   : > { %v923_v49 = vpack.c.bf16 %v908_v47, %v908_v47 }
 0x3eb   : > { %v1172_v50 = vpack.c.bf16 %v1164_v46, %v1164_v46 }
 0x3ec   : > { %v1240_v45 = vsel %vm1181_vm7, %v923_v49, 0 }
 0x3ed   : > { %2178 = vmatmul.msk.bf16.vlgmr.msra.gmra.mxu3 %vm1081_vm8, %v1172_v50  ;;  %1249 = vmatpush.bf16.msrb.mxu0 %v1240_v45 }
 0x3ee   : > { %v2570_v51 = vpop.eup %2569 }
 0x3ef   : > { %v1167_v54 = vmul.f32 %v2570_v51, %v3182_v0  ;;  %v1150_v55 = vpop.xlane.xlu1 %1149 }
 0x3f0   : > { %2571 = vrcp.f32 %v1150_v55  ;;  %2179 = vmatmul.msk.bf16.vlgmr.msrb.gmra.mxu0 %vm1081_vm8, %v1173_v52 }
 0x3f1   : > { %v1175_v56 = vpack.c.bf16 %v1167_v54, %v1167_v54 }
 0x3f3   : > { %2181 = vmatmul.msk.bf16.vlgmr.msra.gmra.mxu2 %vm1081_vm8, %v1175_v56 }
 0x3f6   : > { %v2572_v57 = vpop.eup %2571 }
 0x3f7   : > { %v1168_v53 = vmul.f32 %v2572_v57, %v3187_v8  ;;  %v1132_v58 = vpop.xlane.xlu1 %1131 }
 0x3f8   : > { %2573 = vrcp.f32 %v1132_v58  ;;  %v1444_v58 = vperm.slane %v3104_v62, 2 }
 0x3f9   : > { %v1176_v60 = vpack.c.bf16 %v1168_v53, %v1168_v53 }
 0x3fa   : > { %v918_v59 = vpop.permute.xlu0 %917 }
 0x3fb   : > { %v927_v61 = vpack.c.bf16 %v918_v59, %v918_v59 }
 0x3fd   : > { %v1316_v63 = vsel %vm1181_vm7, %v927_v61, 0  ;;  %2182 = vmatmul.msk.bf16.vlgmr.msrb.gmra.mxu3 %vm1081_vm8, %v1176_v60 }
 0x3fe   : > { %v2574_v0 = vpop.eup %2573  ;;  %1325 = vmatpush.bf16.msra.mxu0 %v1316_v63 }
 0x3ff   : > { %v1162_v1 = vmul.f32 %v2574_v0, %v3192_v15  ;;  %v1144_v4 = vpop.xlane.xlu1 %1143 }
 0x400   : > { %2575 = vrcp.f32 %v1144_v4 }
 0x401   : > { %v1170_v5 = vpack.c.bf16 %v1162_v1, %v1162_v1 }
 0x403   : > { %2176 = vmatmul.msk.bf16.vlgmr.msrb.gmra.mxu1 %vm1081_vm8, %v1170_v5 }
 0x406   : > { %v2576_v6 = vpop.eup %2575 }
 0x407   : > { %v1166_v7 = vmul.f32 %v2576_v6, %v2560_v32 }
 0x409   : > { %v1174_v8 = vpack.c.bf16 %v1166_v7, %v1166_v7 }
 0x413   : > { %2180 = vmatmul.msk.bf16.vlgmr.msra.gmra.mxu1 %vm1081_vm8, %v1174_v8 }
 0x422   : > { %v1153_v9 = vpop.xlane.xlu2 %1152 }
 0x423   : > { %2577 = vrcp.f32 %v1153_v9 }
 0x429   : > { %v2578_v11 = vpop.eup %2577 }
 0x42a   : > { %v1169_v14 = vmul.f32 %v2578_v11, %v2562_v36  ;;  %v2383_v36 = vld [vmem:[%s2986_s30 + $0x38] sm:$0xff]  ;;  %v2274_v11 = vld [vmem:[%s2992_s25 + $0x70] sm:$0xf] }
 0x42b   : > { %1428 = vmatpush.bf16.msrb.mxu1 %v2383_v36  ;;  %v2252_v36 = vld [vmem:[%s2992_s25 + $0x48] sm:$0xf0] }
 0x42c   : > { %v1177_v16 = vpack.c.bf16 %v1169_v14, %v1169_v14  ;;  %v2399_v14 = vld [vmem:[%s2992_s25 + $0x74] sm:$0xf0] }
 0x42e   : > { %2183 = vmatmul.msk.bf16.vlgmr.msra.gmra.mxu0 %vm1081_vm8, %v1177_v16  ;;  %v2398_v16 = vld [vmem:[%s2992_s25 + $0x74] sm:$0xf] }
 0x42f   : > { %1429 = vmatpush.bf16.msrb.mxu1 %v2382_v28 }
 0x433   : > { %1430 = vmatpush.bf16.msrb.mxu1 %v2381_v37  ;;  %v2242_v37 = vld [vmem:[%s2992_s25 + $0x30] sm:$0xf] }
 0x437   : > { %1431 = vmatpush.bf16.msrb.mxu1 %v2380_v38  ;;  %v2391_v38 = vld [vmem:[%s2992_s25 + $0x34] sm:$0xf0] }
 0x43b   : > { %1432 = vmatpush.bf16.msrb.mxu1 %v2379_v40  ;;  %v2390_v40 = vld [vmem:[%s2992_s25 + $0x34] sm:$0xf] }
 0x43f   : > { %1433 = vmatpush.bf16.msrb.mxu1 %v2378_v41  ;;  %v2243_v41 = vor.u32 %v2391_v38, %v2242_v37  ;;  %v1491_v38 = vperm.slane %v3104_v62, 3 }
 0x443   : > { %1434 = vmatpush.bf16.msrb.mxu1 %v2377_v39  ;;  %v2244_v39 = vld [vmem:[%s2992_s25 + $0x38] sm:$0xf0] }
 0x447   : > { %1435 = vmatpush.bf16.msrb.mxu1 %v2376_v42  ;;  %v2247_v42 = vor.u32 %v2390_v40, %v2244_v39 }
 0x456   : > { %v1213_v18 = vpop.f32.mrf.mxu2 }
 0x45e   : > { %v1215_v21 = vpop.f32.mrf.mxu2 }
 0x45f   : > { %v2276_v21 = vld [vmem:[%s2992_s25 + $0x78] sm:$0xf0] }
 0x46d   : > { %v1251_v15 = vpop.f32.mrf.mxu0 }
 0x470   : > { %v1232_v22 = vpop.f32.mrf.mxu3 }
 0x475   : > { %v1253_v23 = vpop.f32.mrf.mxu0 }
 0x476   : > { %v1289_v24 = vpop.f32.mrf.mxu2  ;;  %v2397_v23 = vld [vmem:[%s2992_s25 + $0x64] sm:$0xf0] }
 0x477   : > { %v2520_v20 = vpack.i.bf16 %v1289_v24, %v1213_v18  ;;  %v2275_v18 = vor.u32 %v2399_v14, %v2274_v11  ;;  %v2396_v24 = vld [vmem:[%s2992_s25 + $0x64] sm:$0xf]  ;;  %v2415_v11 = vld [vmem:[%s2994_s23 + $0x78] sm:$0xff] }
 0x478   : > { %v1234_v13 = vpop.f32.mrf.mxu3  ;;  %1778 = vmatpush.bf16.msra.mxu1 %v2415_v11 }
 0x479   : > { %2521 = vrot.lane.b32.xlu1 %v2520_v20, %s2820_s29  ;;  %1602 = vmatpush.bf16.msrb.mxu2 %v2275_v18  ;;  %v2268_v13 = vld [vmem:[%s2992_s25 + $0x68] sm:$0xf0]  ;;  %v2406_v18 = vld [vmem:[%s2994_s23 + $0x30] sm:$0xff] }
 0x47e   : > { %v1291_v17 = vpop.f32.mrf.mxu2 }
 0x47f   : > { %v2271_v17 = vor.u32 %v2396_v24, %v2268_v13  ;;  %v2405_v13 = vld [vmem:[%s2994_s23 + $0x28] sm:$0xff] }
 0x480   : > { %v1194_v19 = vpop.f32.mrf.mxu1  ;;  %v1308_v25 = vpop.f32.mrf.mxu3 }
 0x481   : > { %v2525_v26 = vpack.i.bf16 %v1308_v25, %v1232_v22  ;;  %v2266_v22 = vld [vmem:[%s2992_s25 + $0x60] sm:$0xf]  ;;  %v2395_v25 = vld [vmem:[%s2992_s25 + $0x54] sm:$0xf0] }
 0x482   : > { %v2267_v20 = vor.u32 %v2397_v23, %v2266_v22 }
 0x483   : > { %2526 = vrot.lane.b32.xlu0 %v2525_v26, %s2818_s3  ;;  %v2394_v26 = vld [vmem:[%s2992_s25 + $0x54] sm:$0xf] }
 0x484   : > { %1603 = vmatpush.bf16.msrb.mxu2 %v2267_v20 }
 0x488   : > { %v1196_v27 = vpop.f32.mrf.mxu1  ;;  %v1310_v29 = vpop.f32.mrf.mxu3 }
 0x489   : > { %v2260_v29 = vld [vmem:[%s2992_s25 + $0x58] sm:$0xf0] }
 0x490   : > { %v1270_v30 = vpop.f32.mrf.mxu1 }
 0x498   : > { %v1272_v32 = vpop.f32.mrf.mxu1 }
 0x499   : > { %v2250_v32 = vld [vmem:[%s2992_s25 + $0x40] sm:$0xf] }
 0x4ab   : > { %v1327_v33 = vpop.f32.mrf.mxu0 }
 0x4ac   : > { %v2530_v34 = vpack.i.bf16 %v1327_v33, %v1251_v15  ;;  %v2279_v15 = vor.u32 %v2398_v16, %v2276_v21  ;;  %v2393_v33 = vld [vmem:[%s2992_s25 + $0x44] sm:$0xf0]  ;;  %v2414_v21 = vld [vmem:[%s2994_s23 + $0x70] sm:$0xff] }
 0x4ad   : > { %1779 = vmatpush.bf16.msra.mxu1 %v2414_v21  ;;  %v2587_v21 = vld [vmem:[%s3005_s20] sm:$0x3f] }
 0x4ae   : > { %2531 = vrot.lane.b32.xlu2 %v2530_v34, %s2819_s28  ;;  %1616 = vmatpush.bf16.msra.mxu3 %v2279_v15  ;;  %v2392_v34 = vld [vmem:[%s2992_s25 + $0x44] sm:$0xf] }
 0x4af   : > { %v2255_v28 = vor.u32 %v2392_v34, %v2252_v36 }
 0x4b2   : > { %1617 = vmatpush.bf16.msra.mxu3 %v2271_v17  ;;  %v2413_v17 = vld [vmem:[%s2994_s23 + $0x68] sm:$0xff] }
 0x4b3   : > { %v1329_v35 = vpop.f32.mrf.mxu0  ;;  %1780 = vmatpush.bf16.msra.mxu1 %v2413_v17 }
 0x4b4   : > { %v2251_v35 = vor.u32 %v2393_v33, %v2250_v32 }
 0x4eb   : > { %v2522_v43 = vpop.permute.xlu1 %2521 }
 0x4ec   : > { %v2524_v44 = vunpack.i.h.bf16 %v2522_v43  ;;  %v2523_v46 = vunpack.i.l.bf16 %v2522_v43  ;;  %v2234_v43 = vld [vmem:[%s2992_s25 + $0x20] sm:$0xf] }
 0x4ee   : > { %v1360_v50 = vsel %vm928_vm6, %v1270_v30, %v2524_v44  ;;  %v1343_v45 = vsel %vm928_vm6, %v1194_v19, %v2523_v46  ;;  %v2258_v19 = vld [vmem:[%s2992_s25 + $0x50] sm:$0xf]  ;;  %v2263_v30 = vor.u32 %v2394_v26, %v2260_v29  ;;  %v2388_v44 = vld [vmem:[%s2992_s25 + $0x24] sm:$0xf]  ;;  %v2236_v46 = vld [vmem:[%s2992_s25 + $0x28] sm:$0xf0] }
 0x4ef   : > { %v2259_v27 = vor.u32 %v2395_v25, %v2258_v19  ;;  %v2404_v29 = vld [vmem:[%s2994_s23 + $0x20] sm:$0xff] }
 0x4f0   : > { %1618 = vmatpush.bf16.msra.mxu3 %v2263_v30  ;;  %v2412_v30 = vld [vmem:[%s2994_s23 + $0x60] sm:$0xff] }
 0x4f1   : > { %1604 = vmatpush.bf16.msrb.mxu2 %v2259_v27  ;;  %1781 = vmatpush.bf16.msra.mxu1 %v2412_v30 }
 0x4f4   : > { %1619 = vmatpush.bf16.msra.mxu3 %v2255_v28 }
 0x4f5   : > { %v2527_v31 = vpop.permute.xlu0 %2526  ;;  %1605 = vmatpush.bf16.msrb.mxu2 %v2251_v35 }
 0x4f6   : > { %v2529_v47 = vunpack.i.h.bf16 %v2527_v31  ;;  %v2528_v48 = vunpack.i.l.bf16 %v2527_v31  ;;  %v2389_v31 = vld [vmem:[%s2992_s25 + $0x24] sm:$0xf0] }
 0x4f8   : > { %v1361_v54 = vsel %vm1344_vm9, %v1360_v50, %v2529_v47  ;;  %v1345_v55 = vsel %vm1344_vm9, %v1343_v45, %v2528_v48  ;;  %1620 = vmatpush.bf16.msra.mxu3 %v2247_v42  ;;  %v2239_v50 = vor.u32 %v2388_v44, %v2236_v46  ;;  %v2226_v45 = vld [vmem:[%s2992_s25 + $0x10] sm:$0xf] }
 0x4f9   : > { %1606 = vmatpush.bf16.msrb.mxu2 %v2243_v41 }
 0x4fc   : > { %1621 = vmatpush.bf16.msra.mxu3 %v2239_v50  ;;  %v2410_v50 = vld [vmem:[%s2994_s23 + $0x50] sm:$0xff] }
 0x508   : > { %v2532_v49 = vpop.permute.xlu2 %2531 }
 0x509   : > { %v2534_v51 = vunpack.i.h.bf16 %v2532_v49  ;;  %v2533_v52 = vunpack.i.l.bf16 %v2532_v49  ;;  %v2235_v49 = vor.u32 %v2389_v31, %v2234_v43  ;;  %v1496_v43 = vperm.slane %v3104_v62, 4  ;;  %v2401_v62 = vld [vmem:[%s2994_s23 + $0x8] sm:$0xff] }
 0x50b   : > { %v1347_v56 = vsel %vm1346_vm10, %v1345_v55, %v2533_v52  ;;  %v1362_v57 = vsel %vm1346_vm10, %v1361_v54, %v2534_v51  ;;  %v2387_v51 = vld [vmem:[%s2992_s25 + $0x14] sm:$0xf0]  ;;  %v2386_v52 = vld [vmem:[%s2992_s25 + $0x14] sm:$0xf]  ;;  %v2228_v54 = vld [vmem:[%s2992_s25 + $0x18] sm:$0xf0]  ;;  %1607 = vmatpush.bf16.msrb.mxu2 %v2235_v49 }
 0x50c   : > { %v1363_v53 = vpack.c.bf16 %v1362_v57, %v1347_v56  ;;  %v2227_v55 = vor.u32 %v2387_v51, %v2226_v45  ;;  %v2231_v56 = vor.u32 %v2386_v52, %v2228_v54  ;;  %v2218_v57 = vld [vmem:[%s2992_s25] sm:$0xf]  ;;  %v2403_v49 = vld [vmem:[%s2994_s23 + $0x18] sm:$0xff]  ;;  %v2409_v45 = vld [vmem:[%s2994_s23 + $0x48] sm:$0xff] }
 0x50d   : > { %v2400_v51 = vld [vmem:[%s2994_s23] sm:$0xff]  ;;  %v1516_v54 = vld [vmem:[%s3015_s0] sm:$0x3] }
 0x50e   : > { %1436 = vmatmul.bf16.vlgmr.msrb.gmra.mxu1 %v1363_v53  ;;  %v2385_v53 = vld [vmem:[%s2992_s25 + $0x4] sm:$0xf0]  ;;  %1622 = vmatpush.bf16.msra.mxu3 %v2231_v56  ;;  %v2408_v52 = vld [vmem:[%s2994_s23 + $0x40] sm:$0xff] }
 0x50f   : > { %1608 = vmatpush.bf16.msrb.mxu2 %v2227_v55 }
 0x58b   : > { %v1437_v59 = vpop.f32.mrf.mxu1 }
 0x58c   : > { %v1442_v60 = vadd.f32 %v1437_v59, %v3024_v2  ;;  %v2220_v59 = vld [vmem:[%s2992_s25 + $0x8] sm:$0xf0] }
 0x58e   : > { %v3238_v61 = vadd.f32 %v1444_v58, %v1442_v60 }
 0x590   : > { %1447 = vadd.xlane.f32.xlu0 %v3238_v61 }
 0x593   : > { %v1439_v63 = vpop.f32.mrf.mxu1 }
 0x594   : > { %v1443_v0 = vadd.f32 %v1439_v63, %v3027_v3 }
 0x596   : > { %v3242_v1 = vadd.f32 %v1444_v58, %v1443_v0  ;;  %v2384_v58 = vld [vmem:[%s2992_s25 + $0x4] sm:$0xf]  ;;  %s3382_s25 = sld [smem:[#allocation21_spill]] (!%p2344_p1) }
 0x598   : > { %1449 = vadd.xlane.f32.xlu1 %v3242_v1 }
 0x603   : > { %v1448_v4 = vpop.xlane.xlu0 %1447 }
 0x604   : > { %v1451_v5 = vmul.f32 %v1448_v4, %v3030_v10  ;;  %v2219_v4 = vor.u32 %v2385_v53, %v2218_v57  ;;  %v1518_v57 = vperm.slane %v1516_v54, 0  ;;  %v1519_v53 = vperm.slane %v1516_v54, 1 }
 0x606   : > { %v3247_v2 = vsub.f32 %v3238_v61, %v1451_v5  ;;  %1609 = vmatpush.bf16.msrb.mxu2 %v2219_v4 }
 0x608   : > { %v1455_v6 = vmul.f32 %v3247_v2, %v3247_v2  ;;  %v1492_v41 = vmul.f32 %v1491_v38, %v3247_v2  ;;  %v2411_v2 = vld [vmem:[%s2994_s23 + $0x58] sm:$0xff] }
 0x609   : > { %1782 = vmatpush.bf16.msra.mxu1 %v2411_v2 }
 0x60a   : > { %1457 = vadd.xlane.f32.xlu2 %v1455_v6  ;;  %v2223_v6 = vor.u32 %v2384_v58, %v2220_v59 }
 0x60b   : > { %v1450_v7 = vpop.xlane.xlu1 %1449 }
 0x60c   : > { %v1452_v3 = vmul.f32 %v1450_v7, %v3030_v10  ;;  %1623 = vmatpush.bf16.msra.mxu3 %v2223_v6 }
 0x60d   : > { %1783 = vmatpush.bf16.msra.mxu1 %v2410_v50 }
 0x60e   : > { %v3253_v8 = vsub.f32 %v3242_v1, %v1452_v3 }
 0x610   : > { %v1456_v9 = vmul.f32 %v3253_v8, %v3253_v8  ;;  %v1493_v39 = vmul.f32 %v1491_v38, %v3253_v8  ;;  %v2402_v8 = vld [vmem:[%s2994_s23 + $0x10] sm:$0xff] }
 0x611   : > { %1784 = vmatpush.bf16.msra.mxu1 %v2409_v45 }
 0x612   : > { %1459 = vadd.xlane.f32.xlu0 %v1456_v9  ;;  %v2407_v9 = vld [vmem:[%s2994_s23 + $0x38] sm:$0xff] }
 0x613   : > { %1764 = vmatpush.bf16.msrb.mxu0 %v2407_v9 }
 0x615   : > { %1785 = vmatpush.bf16.msra.mxu1 %v2408_v52 }
 0x617   : > { %1765 = vmatpush.bf16.msrb.mxu0 %v2406_v18 }
 0x61b   : > { %1766 = vmatpush.bf16.msrb.mxu0 %v2405_v13 }
 0x61f   : > { %1767 = vmatpush.bf16.msrb.mxu0 %v2404_v29 }
 0x623   : > { %1768 = vmatpush.bf16.msrb.mxu0 %v2403_v49 }
 0x627   : > { %1769 = vmatpush.bf16.msrb.mxu0 %v2402_v8 }
 0x62b   : > { %1770 = vmatpush.bf16.msrb.mxu0 %v2401_v62 }
 0x62f   : > { %1771 = vmatpush.bf16.msrb.mxu0 %v2400_v51 }
 0x67d   : > { %v1458_v47 = vpop.xlane.xlu2 %1457 }
 0x67e   : > { %v1461_v48 = vmul.f32 %v1458_v47, %v3084_v12 }
 0x680   : > { %2579 = vrsqrt.f32 %v1461_v48  ;;  %vm1470_vm11 = vcmp.eq.f32.partialorder %v1461_v48, inf  ;;  %v1473_v20 = vand.u32 2147483648, %v1461_v48  ;;  %vm1472_vm12 = vcmp.eq.f32.partialorder %v1461_v48, 0.0 }
 0x685   : > { %v1460_v60 = vpop.xlane.xlu0 %1459 }
 0x686   : > { %v2580_v63 = vpop.eup %2579  ;;  %v1462_v0 = vmul.f32 %v1460_v60, %v3084_v12 }
 0x687   : > { %v1464_v5 = vmul.f32 %v2580_v63, %v1461_v48 }
 0x688   : > { %2581 = vrsqrt.f32 %v1462_v0  ;;  %vm1482_vm13 = vcmp.eq.f32.partialorder %v1462_v0, inf  ;;  %v1485_v35 = vand.u32 2147483648, %v1462_v0  ;;  %vm1484_vm14 = vcmp.eq.f32.partialorder %v1462_v0, 0.0 }
 0x689   : > { %v1465_v7 = vmul.f32 %v2580_v63, %v1464_v5 }
 0x68b   : > { %v1466_v3 = vmul.f32 0.5, %v1465_v7 }
 0x68d   : > { %v1467_v14 = vsub.f32 1.5, %v1466_v3 }
 0x68e   : > { %v2582_v16 = vpop.eup %2581 }
 0x68f   : > { %v1468_v15 = vmul.f32 %v2580_v63, %v1467_v14  ;;  %v1476_v22 = vmul.f32 %v2582_v16, %v1462_v0 }
 0x691   : > { %v1469_v23 = vmul.f32 %v1468_v15, %v1461_v48  ;;  %v1477_v24 = vmul.f32 %v2582_v16, %v1476_v22  ;;  %v1794_v15 = vperm.slane %v2587_v21, 5 }
 0x693   : > { %v1478_v19 = vmul.f32 0.5, %v1477_v24  ;;  %v1471_v25 = vsel %vm1470_vm11, %v1461_v48, %v1469_v23 }
 0x694   : > { %v1474_v26 = vsel %vm1472_vm12, %v1473_v20, %v1471_v25 }
 0x695   : > { %v1479_v27 = vsub.f32 1.5, %v1478_v19  ;;  %v1487_v33 = vadd.f32 1e-06, %v1474_v26 }
 0x697   : > { %v1480_v32 = vmul.f32 %v2582_v16, %v1479_v27  ;;  %2583 = vrcp.f32 %v1487_v33 }
 0x699   : > { %v1481_v34 = vmul.f32 %v1480_v32, %v1462_v0 }
 0x69b   : > { %v1483_v36 = vsel %vm1482_vm13, %v1462_v0, %v1481_v34 }
 0x69c   : > { %v1486_v28 = vsel %vm1484_vm14, %v1485_v35, %v1483_v36 }
 0x69d   : > { %v1488_v37 = vadd.f32 1e-06, %v1486_v28  ;;  %v2584_v40 = vpop.eup %2583 }
 0x69e   : > { %v1494_v42 = vmul.f32 %v2584_v40, %v1492_v41 }
 0x69f   : > { %2585 = vrcp.f32 %v1488_v37 }
 0x6a0   : > { %v1497_v46 = vadd.f32 %v1496_v43, %v1494_v42 }
 0x6a5   : > { %v2586_v31 = vpop.eup %2585 }
 0x6a6   : > { %v1495_v44 = vmul.f32 %v2586_v31, %v1493_v39 }
 0x6a8   : > { %v1498_v47 = vadd.f32 %v1496_v43, %v1495_v44 }
 0x6aa   : > { %v1499_v48 = vpack.c.bf16 %v1498_v47, %v1497_v46 }
 0x6ac   : > { %1610 = vmatmul.bf16.vlgmr.msrb.gmra.mxu2 %v1499_v48  ;;  %1624 = vmatmul.bf16.vlgmr.msra.gmra.mxu3 %v1499_v48 }
 0x72f   : > { %v1611_v55 = vpop.f32.mrf.mxu2  ;;  %v1625_v56 = vpop.f32.mrf.mxu3 }
 0x730   : > { %v1612_v58 = vadd.f32 %v1611_v55, %v1518_v57  ;;  %v1626_v59 = vadd.f32 %v1625_v56, %v1519_v53 }
 0x732   : > { %v1630_v5 = vmax.f32 %v1612_v58, 0.0  ;;  %v1631_v6 = vmax.f32 %v1626_v59, 0.0 }
 0x737   : > { %v1613_v60 = vpop.f32.mrf.mxu2  ;;  %v1627_v63 = vpop.f32.mrf.mxu3 }
 0x738   : > { %v1614_v0 = vadd.f32 %v1613_v60, %v1518_v57  ;;  %v1628_v4 = vadd.f32 %v1627_v63, %v1519_v53 }
 0x73a   : > { %v1632_v7 = vmax.f32 %v1614_v0, 0.0  ;;  %v1633_v3 = vmax.f32 %v1628_v4, 0.0 }
 0x73c   : > { %v1634_v9 = vpack.c.bf16 %v1632_v7, %v1630_v5  ;;  %v1635_v11 = vpack.c.bf16 %v1633_v3, %v1631_v6 }
 0x73e   : > { %1772 = vmatmul.bf16.vlgmr.msrb.gmra.mxu0 %v1634_v9  ;;  %1786 = vmatmul.bf16.vlgmr.msra.gmra.mxu1 %v1635_v11 }
 0x7bb   : > { %v1773_v14 = vpop.f32.mrf.mxu0  ;;  %v1787_v16 = vpop.f32.mrf.mxu1 }
 0x7bc   : > { %v1788_v18 = vadd.f32 %v1787_v16, %v1773_v14 }
 0x7be   : > { %v1792_v22 = vadd.f32 %v1788_v18, %v3238_v61 }
 0x7c0   : > { %v1795_v23 = vadd.f32 %v1794_v15, %v1792_v22 }
 0x7c2   : > { %1797 = vst [vmem:[#allocation2] sm:$0xff] %v1795_v23 }
 0x7c3   : > { %v1775_v24 = vpop.f32.mrf.mxu0  ;;  %v1789_v20 = vpop.f32.mrf.mxu1 }
 0x7c4   : > { %v1790_v13 = vadd.f32 %v1789_v20, %v1775_v24 }
 0x7c6   : > { %v1793_v17 = vadd.f32 %v1790_v13, %v3242_v1  ;;  %1802 = sbr.rel (%p2344_p1) target bundleno = 2278 (0x8e6), region = 80 }
 0x7c8   : > { %v1796_v19 = vadd.f32 %v1794_v15, %v1793_v17 }
 0x7ca   : > { %1798 = vst [vmem:[#allocation2 + $0x8] sm:$0xff] %v1796_v19 }
 0x7cb   : > { %1805 = vadd.xlane.f32.xlu0 %v1795_v23  ;;  %v2588_v8 = vld [vmem:[%s3382_s25] ss:$0 sm:$0xff]  ;;  %v2589_v52 = vld [vmem:[%s3382_s25 + $0x1] ss:$0 sm:$0xff] }
 0x7d3   : > { %1807 = vadd.xlane.f32.xlu0 %v1796_v19 }
 0x83e   : > { %v1806_v25 = vpop.xlane.xlu0 %1805 }
 0x83f   : > { %v1809_v26 = vmul.f32 %v1806_v25, %v3030_v10 }
 0x841   : > { %v1811_v27 = vsub.f32 %v1795_v23, %v1809_v26 }
 0x843   : > { %v1813_v29 = vmul.f32 %v1811_v27, %v1811_v27  ;;  %v1850_v51 = vmul.f32 %v2588_v8, %v1811_v27 }
 0x845   : > { %1815 = vadd.xlane.f32.xlu1 %v1813_v29 }
 0x846   : > { %v1808_v61 = vpop.xlane.xlu0 %1807 }
 0x847   : > { %v1810_v30 = vmul.f32 %v1808_v61, %v3030_v10 }
 0x849   : > { %v1812_v32 = vsub.f32 %v1796_v19, %v1810_v30 }
 0x84b   : > { %v1814_v33 = vmul.f32 %v1812_v32, %v1812_v32  ;;  %v1851_v58 = vmul.f32 %v2588_v8, %v1812_v32 }
 0x84d   : > { %1817 = vadd.xlane.f32.xlu1 %v1814_v33 }
 0x8b8   : > { %v1816_v1 = vpop.xlane.xlu1 %1815 }
 0x8b9   : > { %v1819_v34 = vmul.f32 %v1816_v1, %v3084_v12 }
 0x8bb   : > { %2590 = vrsqrt.f32 %v1819_v34  ;;  %vm1828_vm15 = vcmp.eq.f32.partialorder %v1819_v34, inf  ;;  %v1831_v44 = vand.u32 2147483648, %v1819_v34  ;;  %vm1830_vm0 = vcmp.eq.f32.partialorder %v1819_v34, 0.0 }
 0x8c0   : > { %v1818_v35 = vpop.xlane.xlu1 %1817 }
 0x8c1   : > { %v2591_v36 = vpop.eup %2590  ;;  %v1820_v28 = vmul.f32 %v1818_v35, %v3084_v12 }
 0x8c2   : > { %v1822_v37 = vmul.f32 %v2591_v36, %v1819_v34 }
 0x8c3   : > { %2592 = vrsqrt.f32 %v1820_v28  ;;  %vm1840_vm1 = vcmp.eq.f32.partialorder %v1820_v28, inf  ;;  %v1843_v62 = vand.u32 2147483648, %v1820_v28  ;;  %vm1842_vm2 = vcmp.eq.f32.partialorder %v1820_v28, 0.0 }
 0x8c4   : > { %v1823_v38 = vmul.f32 %v2591_v36, %v1822_v37 }
 0x8c6   : > { %v1824_v40 = vmul.f32 0.5, %v1823_v38 }
 0x8c8   : > { %v1825_v41 = vsub.f32 1.5, %v1824_v40 }
 0x8c9   : > { %v2593_v39 = vpop.eup %2592 }
 0x8ca   : > { %v1826_v42 = vmul.f32 %v2591_v36, %v1825_v41  ;;  %v1834_v43 = vmul.f32 %v2593_v39, %v1820_v28 }
 0x8cc   : > { %v1827_v10 = vmul.f32 %v1826_v42, %v1819_v34  ;;  %v1835_v31 = vmul.f32 %v2593_v39, %v1834_v43 }
 0x8ce   : > { %v1829_v46 = vsel %vm1828_vm15, %v1819_v34, %v1827_v10  ;;  %v1836_v47 = vmul.f32 0.5, %v1835_v31 }
 0x8cf   : > { %v1832_v48 = vsel %vm1830_vm0, %v1831_v44, %v1829_v46 }
 0x8d0   : > { %v1845_v49 = vadd.f32 1e-06, %v1832_v48  ;;  %v1837_v2 = vsub.f32 1.5, %v1836_v47 }
 0x8d2   : > { %2594 = vrcp.f32 %v1845_v49  ;;  %v1838_v12 = vmul.f32 %v2593_v39, %v1837_v2 }
 0x8d4   : > { %v1839_v50 = vmul.f32 %v1838_v12, %v1820_v28 }
 0x8d6   : > { %v1841_v45 = vsel %vm1840_vm1, %v1820_v28, %v1839_v50 }
 0x8d7   : > { %v1844_v54 = vsel %vm1842_vm2, %v1843_v62, %v1841_v45 }
 0x8d8   : > { %v2595_v55 = vpop.eup %2594  ;;  %v1846_v56 = vadd.f32 1e-06, %v1844_v54 }
 0x8d9   : > { %v1852_v57 = vmul.f32 %v2595_v55, %v1850_v51 }
 0x8da   : > { %2596 = vrcp.f32 %v1846_v56 }
 0x8db   : > { %v1855_v53 = vadd.f32 %v2589_v52, %v1852_v57 }
 0x8dd   : > { %1857 = vst [vmem:[#allocation11] sm:$0xff] %v1855_v53 }
 0x8e0   : > { %v2597_v59 = vpop.eup %2596 }
 0x8e1   : > { %v1853_v60 = vmul.f32 %v2597_v59, %v1851_v58 }
 0x8e3   : > { %v1856_v63 = vadd.f32 %v2589_v52, %v1853_v60 }
 0x8e5   : > { %1858 = vst [vmem:[#allocation11 + $0x8] sm:$0xff] %v1856_v63 }
 0x8e6 PF: > { %p2446_p2 = scmp.eq.s32.totalorder %s2903_s15, 1  ;;  %s3383_s20 = sld [smem:[#allocation24_spill]] }
 0x8e7   : > { %s2821_s9 = smov [#allocation11]   ;;  %s2822_s18 = smov 128  }
 0x8e8   : > { %s1867_s17 = sshll.u32 %s2821_s9, 4  ;;  %s2823_s27 = smov 8   ;;  %s1868_s17 = int_to_ptr.vmem [resolvable:$true] %s1867_s17 }
 0x8ec   : > { %s1869_s1 = sshll.u32 %s3383_s20, 4  ;;  %s1870_s1 = int_to_ptr.hbm [resolvable:$true] %s1869_s1 }
 0x8ed   : > { %2429 = dma.vmem_to_hbm [thread:$0]  (%p2446_p2), %s1868_s17, 256, %s1870_s1, [#allocation5], %s2822_s18, %s2822_s18, %s2823_s27  }
 0x8ee   : > { %2783 = dma.done.wait (%p2446_p2), [#allocation5], 256  }
 0x8ef   : > { %2785 = vsyncadd (%p2446_p2), [#allocation5], 4294967040 }
 0x8f0 PF: > { %s3384_s19 = sld [smem:[#allocation17_spill]]  ;;  %s3388_s30 = smov %s2792_s10 }
 0x8f1   : > { %s3385_s0 = sld [smem:[#allocation16_spill]]  ;;  %s3390_s12 = smov %s2804_s13 }
 0x8f2   : > { %s3386_s11 = sld [smem:[#allocation19_spill]] }
 0x8f3   : > { %s3387_s15 = sld [smem:[#allocation18_spill]] }
 0x8f6   : > { %s29_s14 = sadd.s32 1, %s3384_s19  }
 0x8f7   : > { %p26_p3 = scmp.ge.s32.totalorder %s29_s14, 4   ;;  %s3389_s10 = smov %s3385_s0 }
 0x8f9   : > { %s3391_s13 = smov %s3387_s15  ;;  %28 = sbr.rel (!%p26_p3) target bundleno = 15 (0xf), region = 151 }
 0x8fe   :  { %1886 = vsyncpa [#allocation4], 1 }
 0x8ff   :  { %1888 = vsyncpa [#allocation4 + $0x1], 1 }
 0x900   :  { %1889 = vsyncpa [#allocation7], 1 }
 0x901   :  { %1891 = vsyncpa [#allocation7 + $0x1], 1 }
 0x902   :  { %1892 = vsyncpa [#allocation10], 1 }
 0x903   :  { %1894 = vsyncpa [#allocation10 + $0x1], 1 }
 0x904   :  { %1895 = vsyncpa [#allocation5], 1 }
 0x905   :  { %1897 = vsyncpa [#allocation5 + $0x1], 1 }

</bundles_post_ra>
